<compile_context>
chip_gen: v7x
topology: tpu7x:2x2x1
jax: 0.10.0
libtpu: 0.0.40
codegen_flags: <defaults>
</compile_context>

<pallas_src>
import jax
import jax.numpy as jnp
from jax.experimental import pallas as pl
from jax.experimental.pallas import tpu as pltpu


# ---------------------------------------------------------------------------
# Kernel 1: SAGEConv-1 (+ReLU) fused with the per-node layer-2 projections.
#   grid = (dst_tiles [parallel], src_tiles [arbitrary])
# ---------------------------------------------------------------------------
def sage1_kernel(a_ref, xs_ref, xd_ref, w1l_ref, w1r_ref, b1_ref, w2_ref,
                 b2_ref, zl_ref, zr_ref, acc_ref):
    k = pl.program_id(1)

    @pl.when(k == 0)
    def _():
        acc_ref[...] = jnp.zeros_like(acc_ref)

    # mean-aggregation partial sum over this source tile (bf16 MXU, f32 acc)
    acc_ref[...] += jnp.dot(a_ref[...], xs_ref[...],
                            preferred_element_type=jnp.float32)

    @pl.when(k == pl.num_programs(1) - 1)
    def _():
        # Two accumulating K=in_pad dots (no in-kernel concat / temp slab);
        # ReLU + bias in f32.
        h1 = (jnp.dot(acc_ref[...].astype(jnp.bfloat16), w1l_ref[...],
                      preferred_element_type=jnp.float32)
              + jnp.dot(xd_ref[...], w1r_ref[...],
                        preferred_element_type=jnp.float32)
              + b1_ref[...])
        h1 = jnp.maximum(h1, 0.0).astype(jnp.bfloat16)
        # Fused [W2_l | W2_r]: single N=2*out_pad matmul, sliced on a 128-lane
        # boundary.  (Layer-2 reassociation: kernel 2 aggregates A @ zl instead
        # of (A @ h1) @ W2_l.)
        z = jnp.dot(h1, w2_ref[...], preferred_element_type=jnp.float32)
        op = zl_ref.shape[-1]
        zl_ref[...] = z[:, :op].astype(jnp.bfloat16)
        zr_ref[...] = (z[:, op:] + b2_ref[...]).astype(jnp.bfloat16)


# ---------------------------------------------------------------------------
# Kernel 2: SAGEConv-2 aggregation + self term + folded global_add_pool.
#   grid = (dst_tiles [parallel], src_tiles [arbitrary])
# ---------------------------------------------------------------------------
def sage2_pool_kernel(a_ref, zl_ref, zr_ref, p_ref, out_ref, acc_ref):
    k = pl.program_id(1)

    @pl.when(k == 0)
    def _():
        acc_ref[...] = jnp.zeros_like(acc_ref)

    acc_ref[...] += jnp.dot(a_ref[...], zl_ref[...],
                            preferred_element_type=jnp.float32)

    @pl.when(k == pl.num_programs(1) - 1)
    def _():
        h2 = acc_ref[...] + zr_ref[...].astype(jnp.float32)   # (tile, out_pad)
        # global_add_pool folded into the dst-tile epilogue; (8, 128) slab
        # -> unmasked stores.
        out_ref[0] = jnp.dot(p_ref[...], h2,
                             preferred_element_type=jnp.float32)


def _round_up(v, m):
    return ((v + m - 1) // m) * m


def _mean_adj_bf16(edge_index, n, n_pad):
    """One-pass bf16 mean adjacency: degree normalization fused into the
    scatter, written straight into the padded slab (padded rows/cols stay 0)."""
    src, dst = edge_index[0], edge_index[1]          # message flows src -> dst
    deg = jnp.zeros((n,), jnp.float32).at[dst].add(1.0)
    inv = (1.0 / jnp.maximum(deg, 1.0)).astype(jnp.bfloat16)
    return jnp.zeros((n_pad, n_pad), jnp.bfloat16).at[dst, src].add(inv[dst])


def topology_net_forward(x, edge_index, batch, params, num_graphs, *, tile=256):
    """Topology_Net forward via two tiled Pallas TPU kernels."""
    n, in_feats = x.shape
    w1l, w1r, b1, w2l, w2r, b2 = params
    h_feats = w1l.shape[1]
    out_feats = w2l.shape[1]

    # ---- padded, MXU / lane / sublane friendly sizes ------------------------
    n_pad = _round_up(n, tile)          # for v7x megacore, prefer mt % 2 == 0
    in_pad = _round_up(max(in_feats, 128), 128)
    h_pad = _round_up(max(h_feats, 128), 128)
    out_pad = _round_up(max(out_feats, 128), 128)
    g_pad = _round_up(max(num_graphs, 8), 8)          # sublane granule

    # ---- bf16 adjacency (one pass), features, pooling matrix ---------------
    a_p = _mean_adj_bf16(edge_index, n, n_pad)
    x_p = jnp.pad(x, ((0, n_pad - n),
                      (0, in_pad - in_feats))).astype(jnp.bfloat16)
    pool = (jnp.arange(g_pad)[:, None] == batch[None, :]).astype(jnp.float32)
    pool_p = jnp.pad(pool, ((0, 0), (0, n_pad - n)))   # padded cols are zero

    # ---- weights: lane-dense padding, bf16 MXU operands ---------------------
    w1l_p = jnp.pad(w1l, ((0, in_pad - in_feats),
                          (0, h_pad - h_feats))).astype(jnp.bfloat16)
    w1r_p = jnp.pad(w1r, ((0, in_pad - in_feats),
                          (0, h_pad - h_feats))).astype(jnp.bfloat16)
    b1_p = jnp.pad(b1.reshape(1, -1),
                   ((0, 0), (0, h_pad - h_feats))).astype(jnp.float32)
    # fused [W2_l | W2_r] with K padded to h_pad, each half padded to out_pad
    w2 = jnp.zeros((h_pad, 2 * out_pad), jnp.float32)
    w2 = w2.at[:h_feats, :out_feats].set(w2l)
    w2 = w2.at[:h_feats, out_pad:out_pad + out_feats].set(w2r)
    w2 = w2.astype(jnp.bfloat16)
    b2_p = jnp.pad(b2.reshape(1, -1),
                   ((0, 0), (0, out_pad - out_feats))).astype(jnp.float32)

    mt = n_pad // tile
    kt = n_pad // tile
    cparams = pltpu.CompilerParams(
        dimension_semantics=("parallel", "arbitrary"),
        vmem_limit_bytes=32 * 1024 * 1024)   # safe for v7x's 64 MiB VMEM

    # ------------- kernel 1: SAGE-1 + ReLU + layer-2 projections ------------
    cost1 = pl.CostEstimate(
        flops=(2 * n_pad * n_pad * in_pad
               + 2 * 2 * n_pad * in_pad * h_pad
               + 2 * n_pad * h_pad * 2 * out_pad),
        transcendentals=0,
        bytes_accessed=(2 * n_pad * n_pad                     # A (bf16)
                        + 2 * mt * n_pad * in_pad             # xs re-stream
                        + 2 * n_pad * in_pad                  # xd
                        + 2 * (2 * in_pad * h_pad + 2 * h_pad * out_pad)
                        + 4 * (h_pad + out_pad)               # biases
                        + 2 * 2 * n_pad * out_pad))           # zl + zr (bf16)
    zl, zr = pl.pallas_call(
        sage1_kernel,
        out_shape=(jax.ShapeDtypeStruct((n_pad, out_pad), jnp.bfloat16),
                   jax.ShapeDtypeStruct((n_pad, out_pad), jnp.bfloat16)),
        grid_spec=pltpu.PrefetchScalarGridSpec(
            num_scalar_prefetch=0,
            grid=(mt, kt),
            in_specs=[
                pl.BlockSpec((tile, tile), lambda i, k: (i, k)),            # A
                pl.BlockSpec((tile, in_pad), lambda i, k: (k, 0)),          # x (src)
                pl.BlockSpec((tile, in_pad), lambda i, k: (i, 0)),          # x (dst)
                pl.BlockSpec((in_pad, h_pad), lambda i, k: (0, 0)),         # W1_l
                pl.BlockSpec((in_pad, h_pad), lambda i, k: (0, 0)),         # W1_r
                pl.BlockSpec((1, h_pad), lambda i, k: (0, 0)),              # b1
                pl.BlockSpec((h_pad, 2 * out_pad), lambda i, k: (0, 0)),    # [W2_l|W2_r]
                pl.BlockSpec((1, out_pad), lambda i, k: (0, 0)),            # b2
            ],
            out_specs=[
                pl.BlockSpec((tile, out_pad), lambda i, k: (i, 0)),         # zl
                pl.BlockSpec((tile, out_pad), lambda i, k: (i, 0)),         # zr
            ],
            scratch_shapes=[pltpu.VMEM((tile, in_pad), jnp.float32)],
        ),
        compiler_params=cparams,
        cost_estimate=cost1,
    )(a_p, x_p, x_p, w1l_p, w1r_p, b1_p, w2, b2_p)

    # ------------ kernel 2: SAGE-2 aggregation + global_add_pool ------------
    cost2 = pl.CostEstimate(
        flops=2 * n_pad * n_pad * out_pad + 2 * g_pad * n_pad * out_pad,
        transcendentals=0,
        bytes_accessed=(2 * n_pad * n_pad                     # A (bf16)
                        + 2 * mt * n_pad * out_pad            # zl re-stream
                        + 2 * n_pad * out_pad                 # zr (bf16)
                        + 4 * g_pad * n_pad                   # pool
                        + 4 * mt * g_pad * out_pad))          # partial pools
    partial = pl.pallas_call(
        sage2_pool_kernel,
        out_shape=jax.ShapeDtypeStruct((mt, g_pad, out_pad), jnp.float32),
        grid_spec=pltpu.PrefetchScalarGridSpec(
            num_scalar_prefetch=0,
            grid=(mt, kt),
            in_specs=[
                pl.BlockSpec((tile, tile), lambda i, k: (i, k)),            # A
                pl.BlockSpec((tile, out_pad), lambda i, k: (k, 0)),         # zl (src)
                pl.BlockSpec((tile, out_pad), lambda i, k: (i, 0)),         # zr (dst)
                pl.BlockSpec((g_pad, tile), lambda i, k: (0, i)),           # pool
            ],
            out_specs=pl.BlockSpec((1, g_pad, out_pad),
                                   lambda i, k: (i, 0, 0)),
            scratch_shapes=[pltpu.VMEM((tile, out_pad), jnp.float32)],
        ),
        compiler_params=cparams,
        cost_estimate=cost2,
    )(a_p, zl, zr, pool_p)

    # tiny epilogue: sum per-dst-tile partial pools, drop sublane/lane padding
    return jnp.sum(partial, axis=0)[:num_graphs, :out_feats]


# ---------------------------------------------------------------------------
# References
# ---------------------------------------------------------------------------
def reference_forward(x, edge_index, batch, params, num_graphs):
    """Pure f32 reference of the module semantics."""
    n = x.shape[0]
    src, dst = edge_index[0], edge_index[1]
    adj = jnp.zeros((n, n), jnp.float32).at[dst, src].add(1.0)
    deg = jnp.sum(adj, axis=1, keepdims=True)
    a = adj / jnp.maximum(deg, 1.0)
    w1l, w1r, b1, w2l, w2r, b2 = params
    h1 = jnp.maximum((a @ x) @ w1l + x @ w1r + b1, 0.0)
    h2 = (a @ h1) @ w2l + h1 @ w2r + b2
    return jax.ops.segment_sum(h2, batch, num_segments=num_graphs)


def reference_forward_bf16(x, edge_index, batch, params, num_graphs):
    """Reference that mirrors the kernel numerics (bf16 operands, f32 accum,
    bf16 zl/zr intermediates)."""
    n = x.shape[0]
    a = _mean_adj_bf16(edge_index, n, n)
    w1l, w1r, b1, w2l, w2r, b2 = params
    bf = jnp.bfloat16
    xb = x.astype(bf)
    agg1 = jnp.dot(a, xb, preferred_element_type=jnp.float32).astype(bf)
    h1 = (jnp.dot(agg1, w1l.astype(bf), preferred_element_type=jnp.float32)
          + jnp.dot(xb, w1r.astype(bf), preferred_element_type=jnp.float32) + b1)
    h1 = jnp.maximum(h1, 0.0).astype(bf)
    zl = jnp.dot(h1, w2l.astype(bf), preferred_element_type=jnp.float32).astype(bf)
    zr = (jnp.dot(h1, w2r.astype(bf), preferred_element_type=jnp.float32)
          + b2).astype(bf)
    h2 = (jnp.dot(a, zl, preferred_element_type=jnp.float32)
          + zr.astype(jnp.float32))
    return jax.ops.segment_sum(h2, batch, num_segments=num_graphs)


def init_params(key, in_feats, h_feats, out_feats):
    ks = jax.random.split(key, 6)

    def lin(k, fin, fout):
        bound = 1.0 / jnp.sqrt(fin)
        return jax.random.uniform(k, (fin, fout), jnp.float32, -bound, bound)

    w1l = lin(ks[0], in_feats, h_feats)
    w1r = lin(ks[1], in_feats, h_feats)
    b1 = jax.random.uniform(ks[2], (1, h_feats), jnp.float32, -0.1, 0.1)
    w2l = lin(ks[3], h_feats, out_feats)
    w2r = lin(ks[4], h_feats, out_feats)
    b2 = jax.random.uniform(ks[5], (1, out_feats), jnp.float32, -0.1, 0.1)
    return (w1l, w1r, b1, w2l, w2r, b2)


if __name__ == "__main__":
    in_feats, h_feats, out_feats = 16, 32, 8
    nodes_per_graph, num_graphs = 150, 2
    num_nodes = nodes_per_graph * num_graphs   # 300 -> pads to 512 -> 2x2 tile grid

    key = jax.random.PRNGKey(0)
    k_x, k_p = jax.random.split(key)
    x = jax.random.normal(k_x, (num_nodes, in_feats), jnp.float32)

    # two ring graphs (edges in both directions), deterministic construction
    srcs, dsts = [], []
    for g in range(num_graphs):
        base = g * nodes_per_graph
        for u in range(nodes_per_graph):
            v = (u + 1) % nodes_per_graph
            srcs += [base + u, base + v]
            dsts += [base + v, base + u]
    edge_index = jnp.array([srcs, dsts], dtype=jnp.int32)
    batch = jnp.repeat(jnp.arange(num_graphs, dtype=jnp.int32), nodes_per_graph)

    params = init_params(k_p, in_feats, h_feats, out_feats)

    out = topology_net_forward(x, edge_index, batch, params, num_graphs)
    out = jax.block_until_ready(out)
    assert out.shape == (num_graphs, out_feats)

    ref_matched = reference_forward_bf16(x, edge_index, batch, params, num_graphs)
    ref_f32 = reference_forward(x, edge_index, batch, params, num_graphs)

    # 1) kernel vs numerics-matched reference (same bf16-operand / f32-accum path)
    err_matched = jnp.max(jnp.abs(out - ref_matched))
    assert err_matched < 5e-2, f"mismatch vs bf16-matched reference: {err_matched}"
    # 2) kernel vs pure-f32 module semantics (bf16-level, scale-aware tolerance)
    scale = jnp.max(jnp.abs(ref_f32)) + 1.0
    err_f32 = jnp.max(jnp.abs(out - ref_f32))
    assert err_f32 < 5e-2 * scale, f"mismatch vs f32 reference: {err_f32}"

    print("KERNEL_OK")
</pallas_src>

<mosaic_0001>
module attributes {stable_mosaic.version = 11 : i64} {
  func.func @sage1_kernel(%arg0: i32, %arg1: i32, %arg2: memref<256x256xbf16, #tpu.memory_space<vmem>>, %arg3: memref<256x128xbf16, #tpu.memory_space<vmem>>, %arg4: memref<256x128xbf16, #tpu.memory_space<vmem>>, %arg5: memref<128x128xbf16, #tpu.memory_space<vmem>>, %arg6: memref<128x128xbf16, #tpu.memory_space<vmem>>, %arg7: memref<1x128xf32, #tpu.memory_space<vmem>>, %arg8: memref<128x256xbf16, #tpu.memory_space<vmem>>, %arg9: memref<1x128xf32, #tpu.memory_space<vmem>>, %arg10: memref<256x128xbf16, #tpu.memory_space<vmem>>, %arg11: memref<256x128xbf16, #tpu.memory_space<vmem>>, %arg12: memref<256x128xf32, #tpu.memory_space<vmem>>) attributes {dimension_semantics = [#tpu.dimension_semantics<parallel>, #tpu.dimension_semantics<arbitrary>], iteration_bounds = array<i64: 2, 2>, scalar_prefetch = 0 : i64, scratch_operands = 1 : i64, tpu.core_type = #tpu.core_type<tc>, window_params = [{transform_indices = @transform_0, window_bounds = array<i64: 256, 256>}, {transform_indices = @transform_1, window_bounds = array<i64: 256, 128>}, {transform_indices = @transform_2, window_bounds = array<i64: 256, 128>}, {pipeline_mode = #tpu.pipeline_mode<synchronous>, transform_indices = @transform_3, window_bounds = array<i64: 128, 128>}, {pipeline_mode = #tpu.pipeline_mode<synchronous>, transform_indices = @transform_4, window_bounds = array<i64: 128, 128>}, {pipeline_mode = #tpu.pipeline_mode<synchronous>, transform_indices = @transform_5, window_bounds = array<i64: 1, 128>}, {pipeline_mode = #tpu.pipeline_mode<synchronous>, transform_indices = @transform_6, window_bounds = array<i64: 128, 256>}, {pipeline_mode = #tpu.pipeline_mode<synchronous>, transform_indices = @transform_7, window_bounds = array<i64: 1, 128>}, {transform_indices = @transform_8, window_bounds = array<i64: 256, 128>}, {transform_indices = @transform_9, window_bounds = array<i64: 256, 128>}]} {
    %c0_i32 = arith.constant 0 : i32
    %0 = arith.cmpi eq, %arg1, %c0_i32 : i32
    %1 = arith.extui %0 : i1 to i32
    %c0_i32_0 = arith.constant 0 : i32
    %2 = arith.cmpi ne, %1, %c0_i32_0 : i32
    scf.if %2 {
      %cst_9 = arith.constant 0.000000e+00 : f32
      %12 = vector.broadcast %cst_9 : f32 to vector<256x128xf32>
      %c0_10 = arith.constant 0 : index
      %c0_11 = arith.constant 0 : index
      %13 = vector.load %arg12[%c0_10, %c0_11] : memref<256x128xf32, #tpu.memory_space<vmem>>, vector<256x128xf32>
      tpu.vector_store %arg12[%c0_10, %c0_11], %12 {strides = array<i32>} : memref<256x128xf32, #tpu.memory_space<vmem>>, vector<256x128xf32>,
    } else {
    }
    %c0 = arith.constant 0 : index
    %c0_1 = arith.constant 0 : index
    %3 = vector.load %arg12[%c0, %c0_1] : memref<256x128xf32, #tpu.memory_space<vmem>>, vector<256x128xf32>
    %c0_2 = arith.constant 0 : index
    %c0_3 = arith.constant 0 : index
    %4 = vector.load %arg2[%c0_2, %c0_3] : memref<256x256xbf16, #tpu.memory_space<vmem>>, vector<256x256xbf16>
    %c0_4 = arith.constant 0 : index
    %c0_5 = arith.constant 0 : index
    %5 = vector.load %arg3[%c0_4, %c0_5] : memref<256x128xbf16, #tpu.memory_space<vmem>>, vector<256x128xbf16>
    %cst = arith.constant dense<0.000000e+00> : vector<256x128xf32>
    %6 = tpu.matmul %4, %5, %cst {dimension_numbers = #tpu.dot_dimension_numbers<[1], [0], [0], [1], [0, 0, 1, 1], [], []>} : vector<256x256xbf16>, vector<256x128xbf16>, vector<256x128xf32> -> vector<256x128xf32>
    %7 = arith.addf %3, %6 : vector<256x128xf32>
    %c0_6 = arith.constant 0 : index
    %c0_7 = arith.constant 0 : index
    %8 = vector.load %arg12[%c0_6, %c0_7] : memref<256x128xf32, #tpu.memory_space<vmem>>, vector<256x128xf32>
    tpu.vector_store %arg12[%c0_6, %c0_7], %7 {strides = array<i32>} : memref<256x128xf32, #tpu.memory_space<vmem>>, vector<256x128xf32>,
    %c1_i32 = arith.constant 1 : i32
    %9 = arith.cmpi eq, %arg1, %c1_i32 : i32
    %10 = arith.extui %9 : i1 to i32
    %c0_i32_8 = arith.constant 0 : i32
    %11 = arith.cmpi ne, %10, %c0_i32_8 : i32
    scf.if %11 {
      %c0_9 = arith.constant 0 : index
      %c0_10 = arith.constant 0 : index
      %12 = vector.load %arg12[%c0_9, %c0_10] : memref<256x128xf32, #tpu.memory_space<vmem>>, vector<256x128xf32>
      %13 = arith.truncf %12 : vector<256x128xf32> to vector<256x128xbf16>
      %c0_11 = arith.constant 0 : index
      %c0_12 = arith.constant 0 : index
      %14 = vector.load %arg5[%c0_11, %c0_12] : memref<128x128xbf16, #tpu.memory_space<vmem>>, vector<128x128xbf16>
      %cst_13 = arith.constant dense<0.000000e+00> : vector<256x128xf32>
      %15 = tpu.matmul %13, %14, %cst_13 {dimension_numbers = #tpu.dot_dimension_numbers<[1], [0], [0], [1], [0, 0, 1, 1], [], []>} : vector<256x128xbf16>, vector<128x128xbf16>, vector<256x128xf32> -> vector<256x128xf32>
      %c0_14 = arith.constant 0 : index
      %c0_15 = arith.constant 0 : index
      %16 = vector.load %arg4[%c0_14, %c0_15] : memref<256x128xbf16, #tpu.memory_space<vmem>>, vector<256x128xbf16>
      %c0_16 = arith.constant 0 : index
      %c0_17 = arith.constant 0 : index
      %17 = vector.load %arg6[%c0_16, %c0_17] : memref<128x128xbf16, #tpu.memory_space<vmem>>, vector<128x128xbf16>
      %cst_18 = arith.constant dense<0.000000e+00> : vector<256x128xf32>
      %18 = tpu.matmul %16, %17, %cst_18 {dimension_numbers = #tpu.dot_dimension_numbers<[1], [0], [0], [1], [0, 0, 1, 1], [], []>} : vector<256x128xbf16>, vector<128x128xbf16>, vector<256x128xf32> -> vector<256x128xf32>
      %19 = arith.addf %15, %18 : vector<256x128xf32>
      %c0_19 = arith.constant 0 : index
      %c0_20 = arith.constant 0 : index
      %20 = vector.load %arg7[%c0_19, %c0_20] : memref<1x128xf32, #tpu.memory_space<vmem>>, vector<1x128xf32>
      %21 = vector.broadcast %20 : vector<1x128xf32> to vector<256x128xf32>
      %22 = arith.addf %19, %21 : vector<256x128xf32>
      %cst_21 = arith.constant 0.000000e+00 : f32
      %23 = vector.broadcast %cst_21 : f32 to vector<256x128xf32>
      %24 = arith.maximumf %22, %23 : vector<256x128xf32>
      %25 = arith.truncf %24 : vector<256x128xf32> to vector<256x128xbf16>
      %c0_22 = arith.constant 0 : index
      %c0_23 = arith.constant 0 : index
      %26 = vector.load %arg8[%c0_22, %c0_23] : memref<128x256xbf16, #tpu.memory_space<vmem>>, vector<128x256xbf16>
      %cst_24 = arith.constant dense<0.000000e+00> : vector<256x256xf32>
      %27 = tpu.matmul %25, %26, %cst_24 {dimension_numbers = #tpu.dot_dimension_numbers<[1], [0], [0], [1], [0, 0, 1, 1], [], []>} : vector<256x128xbf16>, vector<128x256xbf16>, vector<256x256xf32> -> vector<256x256xf32>
      %28 = vector.extract_strided_slice %27 {offsets = [0, 0], sizes = [256, 128], strides = [1, 1]} : vector<256x256xf32> to vector<256x128xf32>
      %29 = arith.truncf %28 : vector<256x128xf32> to vector<256x128xbf16>
      %c0_25 = arith.constant 0 : index
      %c0_26 = arith.constant 0 : index
      %30 = vector.load %arg10[%c0_25, %c0_26] : memref<256x128xbf16, #tpu.memory_space<vmem>>, vector<256x128xbf16>
      tpu.vector_store %arg10[%c0_25, %c0_26], %29 {strides = array<i32>} : memref<256x128xbf16, #tpu.memory_space<vmem>>, vector<256x128xbf16>,
      %31 = vector.extract_strided_slice %27 {offsets = [0, 128], sizes = [256, 128], strides = [1, 1]} : vector<256x256xf32> to vector<256x128xf32>
      %c0_27 = arith.constant 0 : index
      %c0_28 = arith.constant 0 : index
      %32 = vector.load %arg9[%c0_27, %c0_28] : memref<1x128xf32, #tpu.memory_space<vmem>>, vector<1x128xf32>
      %33 = vector.broadcast %32 : vector<1x128xf32> to vector<256x128xf32>
      %34 = arith.addf %31, %33 : vector<256x128xf32>
      %35 = arith.truncf %34 : vector<256x128xf32> to vector<256x128xbf16>
      %c0_29 = arith.constant 0 : index
      %c0_30 = arith.constant 0 : index
      %36 = vector.load %arg11[%c0_29, %c0_30] : memref<256x128xbf16, #tpu.memory_space<vmem>>, vector<256x128xbf16>
      tpu.vector_store %arg11[%c0_29, %c0_30], %35 {strides = array<i32>} : memref<256x128xbf16, #tpu.memory_space<vmem>>, vector<256x128xbf16>,
    } else {
    }
    return
  }
  func.func @transform_0(%arg0: i32, %arg1: i32) -> (i32, i32) {
    %c0_i32 = arith.constant 0 : i32
    return %arg0, %arg1 : i32, i32
  }
  func.func @transform_1(%arg0: i32, %arg1: i32) -> (i32, i32) {
    %c0_i32 = arith.constant 0 : i32
    %c0_i32_0 = arith.constant 0 : i32
    return %arg1, %c0_i32 : i32, i32
  }
  func.func @transform_2(%arg0: i32, %arg1: i32) -> (i32, i32) {
    %c0_i32 = arith.constant 0 : i32
    %c0_i32_0 = arith.constant 0 : i32
    return %arg0, %c0_i32 : i32, i32
  }
  func.func @transform_3(%arg0: i32, %arg1: i32) -> (i32, i32) {
    %c0_i32 = arith.constant 0 : i32
    %c0_i32_0 = arith.constant 0 : i32
    %c0_i32_1 = arith.constant 0 : i32
    return %c0_i32, %c0_i32_0 : i32, i32
  }
  func.func @transform_4(%arg0: i32, %arg1: i32) -> (i32, i32) {
    %c0_i32 = arith.constant 0 : i32
    %c0_i32_0 = arith.constant 0 : i32
    %c0_i32_1 = arith.constant 0 : i32
    return %c0_i32, %c0_i32_0 : i32, i32
  }
  func.func @transform_5(%arg0: i32, %arg1: i32) -> (i32, i32) {
    %c0_i32 = arith.constant 0 : i32
    %c0_i32_0 = arith.constant 0 : i32
    %c0_i32_1 = arith.constant 0 : i32
    return %c0_i32, %c0_i32_0 : i32, i32
  }
  func.func @transform_6(%arg0: i32, %arg1: i32) -> (i32, i32) {
    %c0_i32 = arith.constant 0 : i32
    %c0_i32_0 = arith.constant 0 : i32
    %c0_i32_1 = arith.constant 0 : i32
    return %c0_i32, %c0_i32_0 : i32, i32
  }
  func.func @transform_7(%arg0: i32, %arg1: i32) -> (i32, i32) {
    %c0_i32 = arith.constant 0 : i32
    %c0_i32_0 = arith.constant 0 : i32
    %c0_i32_1 = arith.constant 0 : i32
    return %c0_i32, %c0_i32_0 : i32, i32
  }
  func.func @transform_8(%arg0: i32, %arg1: i32) -> (i32, i32) {
    %c0_i32 = arith.constant 0 : i32
    %c0_i32_0 = arith.constant 0 : i32
    return %arg0, %c0_i32 : i32, i32
  }
  func.func @transform_9(%arg0: i32, %arg1: i32) -> (i32, i32) {
    %c0_i32 = arith.constant 0 : i32
    %c0_i32_0 = arith.constant 0 : i32
    return %arg0, %c0_i32 : i32, i32
  }
}

</mosaic_0001>

<bundles_post_ra>
// kernel: tpu_custom_call.1
= control target key start
LH: loop header
LB: loop body
LE: loop exit
PB: predicated region body
PF: predicated region fallthrough
CT: control target
= control target key end

     0   :  { %s4968_s0 = inlined_call_operand.hbm [shape: bf16[512,512], index: 0, kind: input, shape index: {}]   ;;  %s4969_s1 = inlined_call_operand.hbm [shape: bf16[512,128], index: 1, kind: input, shape index: {}]   ;;  %s4970_s2 = inlined_call_operand.hbm [shape: bf16[512,128], index: 2, kind: input, shape index: {}]   ;;  %s4971_s3 = inlined_call_operand.hbm [shape: bf16[128,128], index: 3, kind: input, shape index: {}]   ;;  %s4972_s4 = inlined_call_operand.hbm [shape: bf16[128,128], index: 4, kind: input, shape index: {}]   ;;  %s4973_s5 = inlined_call_operand.vmem [shape: f32[1,128], index: 5, kind: input, shape index: {}]   ;;  %s4974_s6 = inlined_call_operand.hbm [shape: bf16[128,256], index: 6, kind: input, shape index: {}]   ;;  %s4975_s7 = inlined_call_operand.vmem [shape: f32[1,128], index: 7, kind: input, shape index: {}]   ;;  %s4976_s8 = inlined_call_operand.hbm [shape: bf16[512,128], index: 8, kind: output, shape index: {0}]   ;;  %s4977_s9 = inlined_call_operand.hbm [shape: bf16[512,128], index: 9, kind: output, shape index: {1}]  }
   0x1   :  { %5005 = sst [smem:[#allocation34_spill]] %s4968_s0 }
   0x2   :  { %5006 = sst [smem:[#allocation35_spill]] %s4969_s1 }
   0x3   :  { %5007 = sst [smem:[#allocation36_spill]] %s4970_s2 }
   0x4   :  { %5008 = sst [smem:[#allocation37_spill]] %s4971_s3 }
   0x5   :  { %5009 = sst [smem:[#allocation38_spill]] %s4972_s4 }
   0x6   :  { %5010 = sst [smem:[#allocation39_spill]] %s4973_s5 }
   0x7   :  { %5011 = sst [smem:[#allocation40_spill]] %s4975_s7 }
   0x8   :  { %5012 = sst [smem:[#allocation41_spill]] %s4976_s8 }
   0x9   :  { %5013 = sst [smem:[#allocation42_spill]] %s4977_s9 }
   0xa   :  { %15 = vsyncpa [#allocation4], 0 }
   0xb   :  { %17 = vsyncpa [#allocation4 + $0x1], 0 }
   0xc   :  { %18 = vsyncpa [#allocation7], 0 }
   0xd   :  { %20 = vsyncpa [#allocation7 + $0x1], 0 }
   0xe   :  { %21 = vsyncpa [#allocation10], 0 }
   0xf   :  { %22 = vsyncpa [#allocation13], 0 }
  0x10   :  { %23 = vsyncpa [#allocation5], 0 }
  0x11   :  { %25 = vsyncpa [#allocation5 + $0x1], 0 }
  0x12   :  { %26 = vsyncpa [#allocation16], 0 }
  0x13   :  { %28 = vsyncpa [#allocation16 + $0x1], 0  ;;  %s4211_s30 = smov 0   ;;  %s4213_s10 = smov 0  }
  0x14   :  { %s4215_s11 = smov 0   ;;  %s4217_s12 = smov 0  }
  0x15   :  { %s4219_s13 = smov 0   ;;  %s4221_s14 = smov 0  }
  0x16   :  { %s4223_s15 = smov 0   ;;  %s4225_s16 = smov 0  }
  0x17   :  { %s4227_s17 = smov 0   ;;  %s4229_s18 = smov 0  }
  0x18   :  { %s4231_s19 = smov 0   ;;  %s4233_s20 = smov 0  }
  0x19   :  { %s4235_s21 = smov 0   ;;  %s4237_s22 = smov 0  }
  0x1a LB: > { %5014 = sst [smem:[#allocation24_spill]] %s4106_s13  ;;  %s4282_s23 = sadd.s32 4294967295, %s4142_s22   ;;  %s4142_s22 = sphi %s4237_s22, %s34_s22   ;;  %s4138_s21 = sphi %s4235_s21, %s5095_s21   ;;  %s4134_s20 = sphi %s4233_s20, %s5094_s20   ;;  %s4130_s19 = sphi %s4231_s19, %s5093_s19   ;;  %s4126_s18 = sphi %s4229_s18, %s5092_s18   ;;  %s4122_s17 = sphi %s4227_s17, %s5091_s17   ;;  %s4118_s16 = sphi %s4225_s16, %s5090_s16   ;;  %s4114_s15 = sphi %s4223_s15, %s5089_s15   ;;  %s4110_s14 = sphi %s4221_s14, %s5082_s14   ;;  %s4106_s13 = sphi %s4219_s13, %s5081_s13   ;;  %s4102_s12 = sphi %s4217_s12, %s5088_s12   ;;  %s4098_s11 = sphi %s4215_s11, %s5087_s11   ;;  %s4094_s10 = sphi %s4213_s10, %s5086_s10   ;;  %s4090_s30 = sphi %s4211_s30, %s5085_s30  }
  0x1b   : > { %5015 = sst [smem:[#allocation25_spill]] %s4110_s14  ;;  %p2713_p0 = scmp.ge.s32.totalorder %s4142_s22, 1 }
  0x1c   : > { %5016 = sst [smem:[#allocation26_spill]] %s4126_s18  ;;  %p4981_p1 = scmp.eq.s32.totalorder %s4282_s23, 0 }
  0x1d   : > { %5017 = sst [smem:[#allocation27_spill]] %s4130_s19  ;;  %p288_p3 = scmp.lt.s32.totalorder %s4142_s22, 5 }
  0x1e   : > { %s4144_s25 = smov [#allocation9]   ;;  %s5021_s3 = sld [smem:[#allocation37_spill]] }
  0x1f   : > { %p4288_p4 = pnand %p2713_p0, %p288_p3  ;;  %s300_s26 = sshll.u32 %s4144_s25, 4  ;;  %s301_s26 = int_to_ptr.vmem [resolvable:$true] %s300_s26 }
  0x21   : > { %s5018_s24 = scalar_select %p4288_p4, 1, 0 }
  0x22   : > { %p3495_p5 = pneg %p4288_p4 }
  0x23   : > { %5019 = sst [smem:[#allocation28_spill]] %s5018_s24 }
  0x24   : > { %p4296_p6 = pnand %p3495_p5, %p4981_p1  ;;  %s3774_s9 = scalar_lea.hbm %s5021_s3, 1024 }
  0x25   : > { %p3775_p7 = scmp.ne.s32.totalorder %s5021_s3, %s3774_s9  ;;  %p3781_p11 = scmp.lt.u32.totalorder %s3774_s9, %s5021_s3 }
  0x26   : > { %s5020_s27 = scalar_select %p4296_p6, 1, 0 }
  0x27   : > { %p4308_p8 = pneg %p4296_p6 }
  0x29   : > { %p3777_p9 = pnand %p4308_p8, %p3775_p7 }
  0x2b   : > { %p3778_p10 = pneg %p3777_p9 }
  0x2d   : > { %p3783_p12 = pnand %p3781_p11, %p3778_p10 }
  0x2f   : > { %3786 = shalt.err (!%p3783_p12)
}
  0x30   : > { %s3787_s28 = scalar_lea.vmem %s301_s26, 1024  ;;  %p3795_p5 = scmp.lt.s32.totalorder %s301_s26, %s301_s26 }
  0x31   : > { %p3788_p13 = scmp.ne.s32.totalorder %s301_s26, %s3787_s28  ;;  %p3796_p2 = scmp.lt.s32.totalorder %s3787_s28, %s3787_s28 }
  0x33   : > { %p3790_p0 = pnand %p3788_p13, %p4308_p8  ;;  %p3797_p1 = por %p3796_p2, %p3795_p5 }
  0x35   : > { %p3791_p3 = pneg %p3790_p0 }
  0x37   : > { %p3798_p4 = pnand %p3797_p1, %p3791_p3 }
  0x39   : > { %3801 = shalt.err (!%p3798_p4)
}
  0x3a   : > { %s4983_s8 = smov 64   ;;  %s4985_s5 = smov 4  }
  0x3b   : > { %3498 = dma.hbm_to_vmem [thread:$0]  (!%p4296_p6), %s5021_s3, 1024, %s301_s26, [#allocation10], %s4983_s8, %s4983_s8, %s4985_s5  }
  0x3c   : > { %s43_s19 = sadd.s32 1, %s4134_s20  ;;  %s46_s29 = sadd.s32 1, %s4138_s21 }
  0x3d   : > { %p44_p1 = scmp.ge.s32.totalorder %s43_s19, 2  ;;  %p4996_p2 = scmp.eq.s32.totalorder %s4142_s22, 0 }
  0x3e   : > { %s81_s28 = sadd.s32 1, %s4110_s14  ;;  %p88_p4 = scmp.ne.s32.totalorder %s4110_s14, %s4106_s13 }
  0x3f   : > { %s5097_s19 = smov (%p44_p1, %s43_s19), 0  ;;  %s5099_s29 = smov (!%p44_p1, %s46_s29), %s4138_s21 }
  0x40   : > { %5023 = sst [smem:[#allocation29_spill]] %s5097_s19  ;;  %s51_s18 = ssub.s32 %s4134_s20, %s5097_s19 }
  0x41   : > { %p4340_p7 = por %p88_p4, %p4996_p2  ;;  %p48_p9 = scmp.ge.s32.totalorder %s5099_s29, 2 }
  0x42   : > { %p79_p10 = scmp.eq.s32.totalorder %s51_s18, 0  ;;  %p94_p11 = scmp.ne.s32.totalorder %s4106_s13, %s4102_s12 }
  0x43   : > { %p4995_p12 = scmp.lt.s32.totalorder %s4142_s22, 4  ;;  %s5101_s29 = smov (%p48_p9, %s5099_s29), 0 }
  0x44   : > { %5025 = sst [smem:[#allocation30_spill]] %s5101_s29  ;;  %s4354_s9 = ssub.s32 %s4138_s21, %s5101_s29 }
  0x45   : > { %s4350_s7 = scalar_select %p79_p10, %s4110_s14, %s81_s28  }
  0x46   : > { %p5027_p13 = scmp.eq.s32.totalorder %s4282_s23, 0  ;;  %s52_s5 = sor.u32 %s51_s18, %s4354_s9 }
  0x47   : > { %5026 = sst [smem:[#allocation31_spill]] %s4350_s7  ;;  %p4364_p5 = scmp.eq.s32.totalorder %s52_s5, 0 }
  0x48   : > { %p4358_p0 = por %p94_p11, %p5027_p13  ;;  %s370_s3 = sand.u32 1, %s4142_s22  }
  0x49   : > { %s5030_s12 = scalar_select %p4364_p5, 1, 0 }
  0x4a   : > { %s5028_s8 = scalar_select %p4358_p0, 1, 0 }
  0x4b   : > { %s372_s19 = sand.u32 1, %s4110_s14   ;;  %s2911_s28 = sshll.u32 %s4134_s20, 11 }
  0x4c   : > { %5029 = sst [smem:[#allocation32_spill]] %s5028_s8  ;;  %s2723_s13 = sshll.u32 %s372_s19, 7 }
  0x4d   : > { %s5031_s1 = sld [smem:[#allocation35_spill]]  ;;  %s374_s2 = scalar_lea.vmem [#allocation6], %s2723_s13 }
  0x4e   : > { %s381_s18 = sshll.u32 %s374_s2, 4  ;;  %p4380_p1 = pnand %p4995_p12, %p4340_p7  ;;  %s4384_s18 = int_to_ptr.vmem [resolvable:$true] %s381_s18 }
  0x4f   : > { %s4147_s19 = smov [#allocation11]   ;;  %s4388_s7 = scalar_lea.sflag [#allocation7], %s370_s3 }
  0x50   : > { %s4386_s29 = sshll.u32 %s4147_s19, 4  ;;  %5033 = sst [smem:[#allocation33_spill]] %s4388_s7  ;;  %s314_s29 = int_to_ptr.vmem [resolvable:$true] %s4386_s29 }
  0x51   : > { %p3804_p9 = pneg %p4380_p1 }
  0x53   : > { %s4374_s24 = scalar_lea.hbm %s5031_s1, %s2911_s28  ;;  %s3807_s26 = scalar_lea.hbm %s5031_s1, 4096 }
  0x54   : > { %s3802_s28 = scalar_lea.hbm %s4374_s24, 2048  ;;  %p3808_p11 = scmp.lt.u32.totalorder %s4374_s24, %s5031_s1 }
  0x55   : > { %p3803_p4 = scmp.ne.s32.totalorder %s4374_s24, %s3802_s28  ;;  %p3809_p13 = scmp.lt.u32.totalorder %s3807_s26, %s3802_s28 }
  0x56   : > { %p3811_p12 = scmp.lt.u32.totalorder %s3802_s28, %s4374_s24 }
  0x57   : > { %p3805_p10 = pnand %p3804_p9, %p3803_p4  ;;  %p3810_p3 = por %p3809_p13, %p3808_p11 }
  0x59   : > { %p3806_p7 = pneg %p3805_p10  ;;  %p3812_p2 = por %p3811_p12, %p3810_p3 }
  0x5b   : > { %p3813_p0 = pnand %p3812_p2, %p3806_p7 }
  0x5d   : > { %3816 = shalt.err (!%p3813_p0)
}
  0x5e   : > { %s3817_s3 = scalar_lea.vmem %s4384_s18, 2048  ;;  %s4148_s19 = smov [#allocation6]  }
  0x5f   : > { %p3818_p4 = scmp.ne.s32.totalorder %s4384_s18, %s3817_s3  ;;  %s3822_s2 = sshll.u32 %s4148_s19, 4  ;;  %s3823_s2 = int_to_ptr.vmem [resolvable:$false] %s3822_s2 }
  0x60   : > { %s3824_s14 = scalar_lea.vmem %s3823_s2, 4096  ;;  %p3825_p6 = scmp.lt.s32.totalorder %s4384_s18, %s3823_s2 }
  0x61   : > { %p3820_p10 = pnand %p3818_p4, %p3804_p9  ;;  %p3826_p11 = scmp.lt.s32.totalorder %s3824_s14, %s3817_s3 }
  0x63   : > { %p3821_p5 = pneg %p3820_p10  ;;  %p3827_p13 = por %p3826_p11, %p3825_p6 }
  0x65   : > { %p3828_p12 = pnand %p3827_p13, %p3821_p5 }
  0x67   : > { %3831 = shalt.err (!%p3828_p12)
}
  0x68   : > { %s5034_s8 = smov 4   ;;  %s5035_s28 = smov 64  }
  0x69   : > { %3511 = dma.hbm_to_vmem [thread:$0]  (!%p4380_p1), %s4374_s24, 2048, %s4384_s18, %s4388_s7, %s5035_s28, %s5035_s28, %s5034_s8  }
  0x6a   : > { %s5036_s4 = sld [smem:[#allocation38_spill]] }
  0x70   : > { %s3832_s19 = scalar_lea.hbm %s5036_s4, 1024 }
  0x71   : > { %p3833_p6 = scmp.ne.s32.totalorder %s5036_s4, %s3832_s19  ;;  %p3839_p3 = scmp.lt.u32.totalorder %s3832_s19, %s5036_s4 }
  0x73   : > { %p3835_p2 = pnand %p3833_p6, %p4308_p8 }
  0x75   : > { %p3836_p0 = pneg %p3835_p2 }
  0x77   : > { %p3841_p5 = pnand %p3839_p3, %p3836_p0 }
  0x79   : > { %3844 = shalt.err (!%p3841_p5)
}
  0x7a   : > { %s3845_s1 = scalar_lea.vmem %s314_s29, 1024  ;;  %p3853_p4 = scmp.lt.s32.totalorder %s314_s29, %s314_s29 }
  0x7b   : > { %p3846_p1 = scmp.ne.s32.totalorder %s314_s29, %s3845_s1  ;;  %p3854_p10 = scmp.lt.s32.totalorder %s3845_s1, %s3845_s1 }
  0x7d   : > { %p3848_p9 = pnand %p3846_p1, %p4308_p8  ;;  %p3855_p11 = por %p3854_p10, %p3853_p4 }
  0x7f   : > { %p3849_p7 = pneg %p3848_p9 }
  0x81   : > { %p3856_p13 = pnand %p3855_p11, %p3849_p7 }
  0x83   : > { %3859 = shalt.err (!%p3856_p13)
}
  0x84   : > { %p5037_p12 = scmp.ne.s32.totalorder %s5020_s27, 0  ;;  %s4149_s13 = smov [#allocation12]  }
  0x85   : > { %s329_s26 = sshll.u32 %s4149_s13, 4  ;;  %s3860_s1 = scalar_lea.hbm %s4974_s6, 2048  ;;  %s330_s26 = int_to_ptr.vmem [resolvable:$true] %s329_s26 }
  0x86   : > { %3501 = dma.hbm_to_vmem [thread:$0]  (!%p5037_p12), %s5036_s4, 1024, %s314_s29, [#allocation10], %s5035_s28, %s5035_s28, %s5034_s8  }
  0x87   : > { %p3861_p6 = scmp.ne.s32.totalorder %s4974_s6, %s3860_s1  ;;  %p3867_p3 = scmp.lt.u32.totalorder %s3860_s1, %s4974_s6 }
  0x89   : > { %p3863_p2 = pnand %p3861_p6, %p4308_p8 }
  0x8b   : > { %p3864_p0 = pneg %p3863_p2 }
  0x8d   : > { %p3869_p5 = pnand %p3867_p3, %p3864_p0 }
  0x8f   : > { %3872 = shalt.err (!%p3869_p5)
}
  0x90   : > { %s3873_s29 = scalar_lea.vmem %s330_s26, 2048  ;;  %p3881_p4 = scmp.lt.s32.totalorder %s330_s26, %s330_s26 }
  0x91   : > { %p3874_p1 = scmp.ne.s32.totalorder %s330_s26, %s3873_s29  ;;  %p3882_p10 = scmp.lt.s32.totalorder %s3873_s29, %s3873_s29 }
  0x93   : > { %p3876_p9 = pnand %p3874_p1, %p4308_p8  ;;  %p3883_p11 = por %p3882_p10, %p3881_p4 }
  0x95   : > { %p3877_p7 = pneg %p3876_p9 }
  0x97   : > { %p3884_p13 = pnand %p3883_p11, %p3877_p7 }
  0x99   : > { %3887 = shalt.err (!%p3884_p13)
}
  0x9a   : > { %s5001_s24 = smov 128   ;;  %s4151_s25 = smov 8  }
  0x9b   : > { %3504 = dma.hbm_to_vmem [thread:$0]  (!%p5037_p12), %s4974_s6, 2048, %s330_s26, [#allocation13], %s5001_s24, %s5001_s24, %s4151_s25  }
  0x9c   : > { %s55_s13 = sadd.s32 1, %s4122_s17  ;;  %p62_p8 = scmp.ne.s32.totalorder %s4122_s17, %s4118_s16 }
  0x9d   : > { %p5038_p6 = scmp.ne.s32.totalorder %s5030_s12, 0  ;;  %p5039_p2 = scmp.eq.s32.totalorder %s4142_s22, 0 }
  0x9e   : > { %p68_p3 = scmp.ne.s32.totalorder %s4118_s16, %s4114_s15  ;;  %s346_s27 = sand.u32 1, %s4122_s17  }
  0x9f   : > { %s4468_s19 = scalar_select %p5038_p6, %s4122_s17, %s55_s13  }
  0xa0   : > { %p4472_p0 = por %p5039_p2, %p62_p8  ;;  %s2720_s1 = sshll.u32 %s4134_s20, 1 }
  0xa1   : > { %p5041_p5 = scmp.eq.s32.totalorder %s4282_s23, 0  ;;  %s2718_s26 = sshll.u32 %s346_s27, 8 }
  0xa2   : > { %s2910_s5 = sshll.u32 %s4138_s21, 7  ;;  %s350_s29 = scalar_lea.vmem [#allocation3], %s2718_s26 }
  0xa3   : > { %p4482_p1 = por %p5041_p5, %p68_p3  ;;  %s357_s14 = sadd.s32 %s2910_s5, %s2720_s1 }
  0xa4   : > { %s2722_s12 = sshll.u32 %s357_s14, 6  ;;  %s360_s7 = sshll.u32 %s350_s29, 4  ;;  %s4492_s7 = int_to_ptr.vmem [resolvable:$true] %s360_s7 }
  0xa5   : > { %s5043_s0 = sld [smem:[#allocation34_spill]]  ;;  %p5044_p12 = scmp.lt.s32.totalorder %s4142_s22, 4 }
  0xa6   : > { %s4502_s1 = scalar_lea.sflag [#allocation4], %s346_s27 }
  0xa7   : > { %p4498_p9 = pnand %p5044_p12, %p4472_p0 }
  0xa9   : > { %p3890_p4 = pneg %p4498_p9 }
  0xab   : > { %s4490_s24 = scalar_lea.hbm %s5043_s0, %s2722_s12  ;;  %s3893_s3 = scalar_lea.hbm %s5043_s0, 16384 }
  0xac   : > { %s3888_s26 = scalar_lea.hbm %s4490_s24, 4096  ;;  %p3894_p13 = scmp.lt.u32.totalorder %s4490_s24, %s5043_s0 }
  0xad   : > { %p3889_p7 = scmp.ne.s32.totalorder %s4490_s24, %s3888_s26  ;;  %p3895_p8 = scmp.lt.u32.totalorder %s3893_s3, %s3888_s26 }
  0xae   : > { %p3897_p2 = scmp.lt.u32.totalorder %s3888_s26, %s4490_s24 }
  0xaf   : > { %p3891_p10 = pnand %p3890_p4, %p3889_p7  ;;  %p3896_p6 = por %p3895_p8, %p3894_p13 }
  0xb1   : > { %p3892_p11 = pneg %p3891_p10  ;;  %p3898_p0 = por %p3897_p2, %p3896_p6 }
  0xb3   : > { %p3899_p3 = pnand %p3898_p0, %p3892_p11 }
  0xb5   : > { %3902 = shalt.err (!%p3899_p3)
}
  0xb6   : > { %s3903_s27 = scalar_lea.vmem %s4492_s7, 4096  ;;  %s4152_s18 = smov [#allocation3]  }
  0xb7   : > { %p3904_p5 = scmp.ne.s32.totalorder %s4492_s7, %s3903_s27  ;;  %s3908_s13 = sshll.u32 %s4152_s18, 4  ;;  %s3909_s13 = int_to_ptr.vmem [resolvable:$false] %s3908_s13 }
  0xb8   : > { %s3910_s5 = scalar_lea.vmem %s3909_s13, 8192  ;;  %p3911_p10 = scmp.lt.s32.totalorder %s4492_s7, %s3909_s13 }
  0xb9   : > { %p3906_p12 = pnand %p3904_p5, %p3890_p4  ;;  %p3912_p13 = scmp.lt.s32.totalorder %s3910_s5, %s3903_s27 }
  0xbb   : > { %p3907_p7 = pneg %p3906_p12  ;;  %p3913_p8 = por %p3912_p13, %p3911_p10 }
  0xbd   : > { %p3914_p6 = pnand %p3913_p8, %p3907_p7 }
  0xbf   : > { %3917 = shalt.err (!%p3914_p6)
}
  0xc0   : > { %s4153_s26 = smov 256   ;;  %s5046_s14 = smov 128  }
  0xc1   : > { %3508 = dma.hbm_to_vmem [thread:$0]  (!%p4498_p9), %s4490_s24, 4096, %s4492_s7, %s4502_s1, %s4153_s26, %s5046_s14, %s4151_s25  }
  0xc2   : > { %s2712_s15 = sadd.s32 4294967294, %s4142_s22   ;;  %s107_s3 = sadd.s32 1, %s4098_s11 }
  0xc3   : > { %p114_p4 = scmp.ne.s32.totalorder %s4098_s11, %s4094_s10  ;;  %p5047_p11 = scmp.eq.s32.totalorder %s4354_s9, 0 }
  0xc4   : > { %p5048_p2 = scmp.eq.s32.totalorder %s4142_s22, 0  ;;  %p120_p3 = scmp.ne.s32.totalorder %s4094_s10, %s4090_s30 }
  0xc5   : > { %s4539_s12 = scalar_select %p5047_p11, %s4098_s11, %s107_s3  }
  0xc6   : > { %p4543_p0 = por %p114_p4, %p5048_p2  ;;  %p5050_p5 = scmp.eq.s32.totalorder %s4282_s23, 3 }
  0xc7   : > { %p255_p9 = scmp.eq.s32.totalorder %s2712_s15, 3  ;;  %p5052_p7 = scmp.eq.s32.totalorder %s4282_s23, 0 }
  0xc8   : > { %p4551_p12 = por %p5050_p5, %p114_p4  ;;  %s393_s9 = sand.u32 1, %s4098_s11  }
  0xc9   : > { %p4557_p10 = por %p120_p3, %p5052_p7  ;;  %p4562_p13 = por %p255_p9, %p120_p3 }
  0xca   : > { %s5051_s27 = scalar_select %p4551_p12, 1, 0 }
  0xcb   : > { %s5053_s24 = scalar_select %p4557_p10, 1, 0 }
  0xcc   : > { %s5054_s25 = scalar_select %p4562_p13, 1, 0 }
  0xcd   : > { %s2726_s7 = sshll.u32 %s393_s9, 7  ;;  %s2912_s1 = sshll.u32 %s4138_s21, 11 }
  0xce   : > { %s5055_s5 = sld [smem:[#allocation36_spill]]  ;;  %s395_s14 = scalar_lea.vmem [#allocation8], %s2726_s7 }
  0xcf   : > { %s402_s15 = sshll.u32 %s395_s14, 4  ;;  %p5056_p8 = scmp.lt.s32.totalorder %s4142_s22, 4  ;;  %s4572_s15 = int_to_ptr.vmem [resolvable:$true] %s402_s15 }
  0xd1   : > { %p4578_p6 = pnand %p5056_p8, %p4543_p0 }
  0xd3   : > { %p3920_p11 = pneg %p4578_p6 }
  0xd4   : > { %s4570_s26 = scalar_lea.hbm %s5055_s5, %s2912_s1  ;;  %s3923_s18 = scalar_lea.hbm %s5055_s5, 4096 }
  0xd5   : > { %s3918_s9 = scalar_lea.hbm %s4570_s26, 2048  ;;  %p3924_p0 = scmp.lt.u32.totalorder %s4570_s26, %s5055_s5 }
  0xd6   : > { %p3919_p4 = scmp.ne.s32.totalorder %s4570_s26, %s3918_s9  ;;  %p3925_p5 = scmp.lt.u32.totalorder %s3923_s18, %s3918_s9 }
  0xd7   : > { %p3927_p7 = scmp.lt.u32.totalorder %s3918_s9, %s4570_s26 }
  0xd8   : > { %p3921_p2 = pnand %p3920_p11, %p3919_p4  ;;  %p3926_p9 = por %p3925_p5, %p3924_p0 }
  0xda   : > { %p3922_p3 = pneg %p3921_p2  ;;  %p3928_p8 = por %p3927_p7, %p3926_p9 }
  0xdc   : > { %p3929_p13 = pnand %p3928_p8, %p3922_p3 }
  0xde   : > { %3932 = shalt.err (!%p3929_p13)
}
  0xdf   : > { %s3933_s14 = scalar_lea.vmem %s4572_s15, 2048  ;;  %s4154_s7 = smov [#allocation8]  }
  0xe0   : > { %p3934_p4 = scmp.ne.s32.totalorder %s4572_s15, %s3933_s14  ;;  %s3938_s1 = sshll.u32 %s4154_s7, 4  ;;  %s3939_s1 = int_to_ptr.vmem [resolvable:$false] %s3938_s1 }
  0xe1   : > { %s3940_s29 = scalar_lea.vmem %s3939_s1, 4096  ;;  %p3941_p10 = scmp.lt.s32.totalorder %s4572_s15, %s3939_s1 }
  0xe2   : > { %p3936_p2 = pnand %p3934_p4, %p3920_p11  ;;  %p3942_p0 = scmp.lt.s32.totalorder %s3940_s29, %s3933_s14 }
  0xe4   : > { %p3937_p12 = pneg %p3936_p2  ;;  %p3943_p5 = por %p3942_p0, %p3941_p10 }
  0xe6   : > { %p3944_p9 = pnand %p3943_p5, %p3937_p12 }
  0xe8   : > { %3947 = shalt.err (!%p3944_p9)
}
  0xe9   : > { %s5058_s9 = sld [smem:[#allocation33_spill]]  ;;  %s5059_s18 = sld [smem:[#allocation28_spill]] }
  0xef   : > { %3514 = dma.hbm_to_vmem [thread:$0]  (!%p4578_p6), %s4570_s26, 2048, %s4572_s15, %s5058_s9, %s5035_s28, %s5035_s28, %s5034_s8  }
  0xf0   : > { %p5060_p13 = scmp.ne.s32.totalorder %s5059_s18, 0 }
  0xf1   : > { %s416_s13 = sand.u32 (!%p5060_p13), 1, %s4118_s16  }
  0xf2   : > { %414 = sbr.rel (%p5060_p13) target bundleno = 1288 (0x508), region = 52  ;;  %s2730_s7 = sshll.u32 (!%p5060_p13), %s416_s13, 8 }
  0xf3   : > { %s417_s14 = scalar_lea.sflag (!%p5060_p13), [#allocation4], %s416_s13  ;;  %s4614_s1 = scalar_lea.vmem (!%p5060_p13), [#allocation3], %s2730_s7 }
  0xf9   : > { %4061 = dma.done.wait (%p4482_p1), %s417_s14, 4096  }
  0xfa   : > { %4063 = vsyncadd (%p4482_p1), %s417_s14, 4294963200  ;;  %s5061_s3 = sld [smem:[#allocation24_spill]]  ;;  %s425_s0 = sand.u32 1, %s4282_s23  }
  0xfb   : > { %s5062_s29 = sld [smem:[#allocation32_spill]]  ;;  %s426_s26 = scalar_lea.sflag [#allocation7], %s425_s0 }
 0x100   : > { %s427_s8 = sand.u32 1, %s5061_s3  }
 0x101   : > { %s2731_s28 = sshll.u32 %s427_s8, 7  ;;  %p5063_p12 = scmp.ne.s32.totalorder %s5062_s29, 0 }
 0x102   : > { %s4622_s15 = scalar_lea.vmem [#allocation6], %s2731_s28 }
 0x103   : > { %4065 = dma.done.wait (%p5063_p12), %s426_s26, 2048  }
 0x104   : > { %4067 = vsyncadd (%p5063_p12), %s426_s26, 4294965248  ;;  %s4629_s9 = sand.u32 1, %s4094_s10   ;;  %p5064_p1 = scmp.ne.s32.totalorder %s5053_s24, 0 }
 0x105   : > { %s2732_s2 = sshll.u32 %s4629_s9, 7 }
 0x106   : > { %s4632_s18 = scalar_lea.vmem [#allocation8], %s2732_s2 }
 0x107   : > { %4069 = dma.done.wait (%p5064_p1), %s426_s26, 2048  }
 0x108   : > { %4071 = vsyncadd (%p5064_p1), %s426_s26, 4294965248  ;;  %p5065_p10 = scmp.eq.s32.totalorder %s4282_s23, 0 }
 0x10a   : > { %4073 = dma.done.wait (%p5065_p10), [#allocation10], 2048   ;;  %p5066_p6 = pmov %p5065_p10 }
 0x10c   : > { %4075 = vsyncadd (%p5066_p6), [#allocation10], 4294965248  ;;  %p5067_p11 = pmov %p5066_p6 }
 0x10d   : > { %p5068_p3 = pmov %p5066_p6 }
 0x10e   : > { %4077 = dma.done.wait (%p5067_p11), [#allocation13], 2048  }
 0x10f   : > { %4079 = vsyncadd (%p5068_p3), [#allocation13], 4294965248  ;;  %s4646_s0 = scalar_lea.vmem [#allocation14], %s2732_s2  ;;  %s4648_s13 = scalar_lea.vmem [#allocation15], %s2732_s2 }
 0x110   : > { %s5069_s7 = sld [smem:[#allocation26_spill]] }
 0x116   : > { %p2738_p7 = scmp.ne.s32.totalorder %s5069_s7, 0 }
 0x117   : > { %v4155_v0 = vmov (!%p2738_p7), 0.0  }
 0x118   : > { %510 = sbr.rel (%p2738_p7) target bundleno = 296 (0x128), region = 80  ;;  %511 = vst [vmem:[#allocation2] sm:$0xff] (!%p2738_p7), %v4155_v0  ;;  %512 = vst [vmem:[#allocation2 + $0x8] sm:$0xff] (!%p2738_p7), %v4155_v0 }
 0x119   : > { %513 = vst [vmem:[#allocation2 + $0x10] sm:$0xff] (!%p2738_p7), %v4155_v0  ;;  %514 = vst [vmem:[#allocation2 + $0x18] sm:$0xff] (!%p2738_p7), %v4155_v0 }
 0x11a   : > { %515 = vst [vmem:[#allocation2 + $0x20] sm:$0xff] (!%p2738_p7), %v4155_v0  ;;  %516 = vst [vmem:[#allocation2 + $0x28] sm:$0xff] (!%p2738_p7), %v4155_v0 }
 0x11b   : > { %517 = vst [vmem:[#allocation2 + $0x30] sm:$0xff] (!%p2738_p7), %v4155_v0  ;;  %518 = vst [vmem:[#allocation2 + $0x38] sm:$0xff] (!%p2738_p7), %v4155_v0 }
 0x11c   : > { %519 = vst [vmem:[#allocation2 + $0x40] sm:$0xff] (!%p2738_p7), %v4155_v0  ;;  %520 = vst [vmem:[#allocation2 + $0x48] sm:$0xff] (!%p2738_p7), %v4155_v0 }
 0x11d   : > { %521 = vst [vmem:[#allocation2 + $0x50] sm:$0xff] (!%p2738_p7), %v4155_v0  ;;  %522 = vst [vmem:[#allocation2 + $0x58] sm:$0xff] (!%p2738_p7), %v4155_v0 }
 0x11e   : > { %523 = vst [vmem:[#allocation2 + $0x60] sm:$0xff] (!%p2738_p7), %v4155_v0  ;;  %524 = vst [vmem:[#allocation2 + $0x68] sm:$0xff] (!%p2738_p7), %v4155_v0 }
 0x11f   : > { %525 = vst [vmem:[#allocation2 + $0x70] sm:$0xff] %v4155_v0  ;;  %526 = vst [vmem:[#allocation2 + $0x78] sm:$0xff] %v4155_v0 }
 0x120   : > { %527 = vst [vmem:[#allocation2 + $0x80] sm:$0xff] %v4155_v0  ;;  %528 = vst [vmem:[#allocation2 + $0x88] sm:$0xff] %v4155_v0 }
 0x121   : > { %529 = vst [vmem:[#allocation2 + $0x90] sm:$0xff] %v4155_v0  ;;  %530 = vst [vmem:[#allocation2 + $0x98] sm:$0xff] %v4155_v0 }
 0x122   : > { %531 = vst [vmem:[#allocation2 + $0xa0] sm:$0xff] %v4155_v0  ;;  %532 = vst [vmem:[#allocation2 + $0xa8] sm:$0xff] %v4155_v0 }
 0x123   : > { %533 = vst [vmem:[#allocation2 + $0xb0] sm:$0xff] %v4155_v0  ;;  %534 = vst [vmem:[#allocation2 + $0xb8] sm:$0xff] %v4155_v0 }
 0x124   : > { %535 = vst [vmem:[#allocation2 + $0xc0] sm:$0xff] %v4155_v0  ;;  %536 = vst [vmem:[#allocation2 + $0xc8] sm:$0xff] %v4155_v0 }
 0x125   : > { %537 = vst [vmem:[#allocation2 + $0xd0] sm:$0xff] %v4155_v0  ;;  %538 = vst [vmem:[#allocation2 + $0xd8] sm:$0xff] %v4155_v0 }
 0x126   : > { %539 = vst [vmem:[#allocation2 + $0xe0] sm:$0xff] %v4155_v0  ;;  %540 = vst [vmem:[#allocation2 + $0xe8] sm:$0xff] %v4155_v0 }
 0x127   : > { %541 = vst [vmem:[#allocation2 + $0xf0] sm:$0xff] %v4155_v0  ;;  %542 = vst [vmem:[#allocation2 + $0xf8] sm:$0xff] %v4155_v0 }
 0x128 PF: > { %v3654_v1 = vld [vmem:[%s4622_s15 + $0x40] sm:$0xff]   ;;  %v3656_v3 = vld [vmem:[%s4622_s15 + $0x48] sm:$0xff]   ;;  %v3658_v5 = vld [vmem:[%s4622_s15 + $0x50] sm:$0xff]   ;;  %s5070_s23 = sld [smem:[#allocation26_spill]] }
 0x129   : > { %v3655_v2 = vld [vmem:[%s4622_s15] sm:$0xff]   ;;  %3169 = vmatprep.subr.bf16.mxu0 %v3654_v1  ;;  %3425 = vmatprep.subr.bf16.mxu1 %v3654_v1  ;;  %v3657_v4 = vld [vmem:[%s4622_s15 + $0x8] sm:$0xff]   ;;  %v3659_v6 = vld [vmem:[%s4622_s15 + $0x10] sm:$0xff]  }
 0x12a   : > { %3170 = vmatpush3.bf16.msra.mxu0 %v3655_v2  ;;  %3433 = vmatpush3.bf16.msra.mxu1 %v3655_v2  ;;  %v3660_v7 = vld [vmem:[%s4622_s15 + $0x58] sm:$0xff]   ;;  %v3662_v9 = vld [vmem:[%s4622_s15 + $0x60] sm:$0xff]   ;;  %v3664_v11 = vld [vmem:[%s4622_s15 + $0x68] sm:$0xff]  }
 0x12b   : > { %3171 = vmatprep.subr.bf16.mxu0 %v3656_v3  ;;  %3426 = vmatprep.subr.bf16.mxu1 %v3656_v3  ;;  %v3661_v8 = vld [vmem:[%s4622_s15 + $0x18] sm:$0xff]   ;;  %v3663_v10 = vld [vmem:[%s4622_s15 + $0x20] sm:$0xff]   ;;  %v3665_v14 = vld [vmem:[%s4622_s15 + $0x28] sm:$0xff]  }
 0x12c   : > { %v3672_v12 = vld [vmem:[%s4614_s1 + $0x4] ss:$8 sps:$4 sm:$0xff]   ;;  %v3666_v15 = vld [vmem:[%s4622_s15 + $0x70] sm:$0xff]   ;;  %v3668_v17 = vld [vmem:[%s4622_s15 + $0x78] sm:$0xff]  }
 0x12d   : > { %v3675_v13 = vld [vmem:[%s4614_s1 + $0x84] ss:$8 sps:$4 sm:$0xff]   ;;  %927 = vmatprep.mubr.bf16.mxu0 %v3672_v12  ;;  %v3667_v16 = vld [vmem:[%s4622_s15 + $0x30] sm:$0xff]   ;;  %v3669_v18 = vld [vmem:[%s4622_s15 + $0x38] sm:$0xff]  }
 0x12e   : > { %3172 = vmatpush3.bf16.msra.mxu0 %v3657_v4  ;;  %3434 = vmatpush3.bf16.msra.mxu1 %v3657_v4  ;;  %v3670_v19 = vld [vmem:[%s4614_s1] ss:$8 sps:$4 sm:$0xff]   ;;  %v3676_v21 = vld [vmem:[%s4614_s1 + $0x14] ss:$8 sps:$4 sm:$0xff]   ;;  %v3680_v23 = vld [vmem:[%s4614_s1 + $0x10] ss:$8 sps:$4 sm:$0xff]  }
 0x12f   : > { %3173 = vmatprep.subr.bf16.mxu0 %v3658_v5  ;;  %3427 = vmatprep.subr.bf16.mxu1 %v3658_v5  ;;  %v3673_v20 = vld [vmem:[%s4614_s1 + $0x80] ss:$8 sps:$4 sm:$0xff]   ;;  %v3678_v22 = vld [vmem:[%s4614_s1 + $0x94] ss:$8 sps:$4 sm:$0xff]   ;;  %v3681_v24 = vld [vmem:[%s4614_s1 + $0x90] ss:$8 sps:$4 sm:$0xff]  }
 0x130   : > { %991 = vmatprep.mubr.bf16.mxu1 %v3675_v13  ;;  %v3682_v25 = vld [vmem:[%s4614_s1 + $0x24] ss:$8 sps:$4 sm:$0xff]   ;;  %v3686_v27 = vld [vmem:[%s4614_s1 + $0x20] ss:$8 sps:$4 sm:$0xff]   ;;  %v3688_v29 = vld [vmem:[%s4614_s1 + $0x34] ss:$8 sps:$4 sm:$0xff]  }
 0x131   : > { %v3684_v26 = vld [vmem:[%s4614_s1 + $0xa4] ss:$8 sps:$4 sm:$0xff]   ;;  %v3687_v28 = vld [vmem:[%s4614_s1 + $0xa0] ss:$8 sps:$4 sm:$0xff]   ;;  %v3690_v30 = vld [vmem:[%s4614_s1 + $0xb4] ss:$8 sps:$4 sm:$0xff]  }
 0x132   : > { %3174 = vmatpush3.bf16.msra.mxu0 %v3659_v6  ;;  %3435 = vmatpush3.bf16.msra.mxu1 %v3659_v6  ;;  %v3692_v31 = vld [vmem:[%s4614_s1 + $0x30] ss:$8 sps:$4 sm:$0xff]   ;;  %v3694_v33 = vld [vmem:[%s4614_s1 + $0x44] ss:$8 sps:$4 sm:$0xff]   ;;  %v3698_v35 = vld [vmem:[%s4614_s1 + $0x40] ss:$8 sps:$4 sm:$0xff]  }
 0x133   : > { %3175 = vmatprep.subr.bf16.mxu0 %v3660_v7  ;;  %3428 = vmatprep.subr.bf16.mxu1 %v3660_v7  ;;  %v3693_v32 = vld [vmem:[%s4614_s1 + $0xb0] ss:$8 sps:$4 sm:$0xff]   ;;  %v3696_v34 = vld [vmem:[%s4614_s1 + $0xc4] ss:$8 sps:$4 sm:$0xff]   ;;  %v3699_v36 = vld [vmem:[%s4614_s1 + $0xc0] ss:$8 sps:$4 sm:$0xff]  }
 0x134   : > { %v3700_v37 = vld [vmem:[%s4614_s1 + $0x54] ss:$8 sps:$4 sm:$0xff]   ;;  %v3704_v39 = vld [vmem:[%s4614_s1 + $0x50] ss:$8 sps:$4 sm:$0xff]   ;;  %v3706_v41 = vld [vmem:[%s4614_s1 + $0x64] ss:$8 sps:$4 sm:$0xff]  }
 0x135   : > { %v3702_v38 = vld [vmem:[%s4614_s1 + $0xd4] ss:$8 sps:$4 sm:$0xff]   ;;  %v3705_v40 = vld [vmem:[%s4614_s1 + $0xd0] ss:$8 sps:$4 sm:$0xff]   ;;  %v3708_v42 = vld [vmem:[%s4614_s1 + $0xe4] ss:$8 sps:$4 sm:$0xff]  }
 0x136   : > { %3176 = vmatpush3.bf16.msra.mxu0 %v3661_v8  ;;  %3436 = vmatpush3.bf16.msra.mxu1 %v3661_v8  ;;  %v3710_v43 = vld [vmem:[%s4614_s1 + $0x60] ss:$8 sps:$4 sm:$0xff]   ;;  %v3712_v45 = vld [vmem:[%s4614_s1 + $0x74] ss:$8 sps:$4 sm:$0xff]   ;;  %v3716_v47 = vld [vmem:[%s4614_s1 + $0x70] ss:$8 sps:$4 sm:$0xff]  }
 0x137   : > { %3177 = vmatprep.subr.bf16.mxu0 %v3662_v9  ;;  %3429 = vmatprep.subr.bf16.mxu1 %v3662_v9  ;;  %v3711_v44 = vld [vmem:[%s4614_s1 + $0xe0] ss:$8 sps:$4 sm:$0xff]   ;;  %v3714_v46 = vld [vmem:[%s4614_s1 + $0xf4] ss:$8 sps:$4 sm:$0xff]   ;;  %v3717_v48 = vld [vmem:[%s4614_s1 + $0xf0] ss:$8 sps:$4 sm:$0xff]  }
 0x138   : > { %v543_v51 = vld [vmem:[#allocation2] sm:$0xff]  ;;  %v544_v59 = vld [vmem:[#allocation2 + $0x8] sm:$0xff]  ;;  %v545_v7 = vld [vmem:[#allocation2 + $0x10] sm:$0xff]  ;;  %p2787_p8 = scmp.ne.s32.totalorder %s5070_s23, 1 }
 0x139   : > { %v559_v53 = vld [vmem:[#allocation2 + $0x80] sm:$0xff]  ;;  %v560_v61 = vld [vmem:[#allocation2 + $0x88] sm:$0xff]  ;;  %v561_v9 = vld [vmem:[#allocation2 + $0x90] sm:$0xff]  ;;  %s5071_s1 = sld [smem:[#allocation39_spill]] (!%p2787_p8)  ;;  %s5072_s8 = sld [smem:[#allocation40_spill]] (!%p2787_p8) }
 0x13a   : > { %3178 = vmatpush3.bf16.msra.mxu0 %v3663_v10  ;;  %3437 = vmatpush3.bf16.msra.mxu1 %v3663_v10 }
 0x13b   : > { %3179 = vmatprep.subr.bf16.mxu0 %v3664_v11  ;;  %3430 = vmatprep.subr.bf16.mxu1 %v3664_v11 }
 0x13e   : > { %3180 = vmatpush3.bf16.msra.mxu0 %v3665_v14  ;;  %3438 = vmatpush3.bf16.msra.mxu1 %v3665_v14 }
 0x13f   : > { %3181 = vmatprep.subr.bf16.mxu0 %v3666_v15  ;;  %3431 = vmatprep.subr.bf16.mxu1 %v3666_v15  ;;  %v546_v15 = vld [vmem:[#allocation2 + $0x18] sm:$0xff] }
 0x142   : > { %3182 = vmatpush3.bf16.msra.mxu0 %v3667_v16  ;;  %3439 = vmatpush3.bf16.msra.mxu1 %v3667_v16 }
 0x143   : > { %3183 = vmatprep.subr.bf16.mxu0 %v3668_v17  ;;  %3432 = vmatprep.subr.bf16.mxu1 %v3668_v17  ;;  %v562_v17 = vld [vmem:[#allocation2 + $0x98] sm:$0xff] }
 0x146   : > { %3184 = vmatpush3.bf16.msra.mxu0 %v3669_v18  ;;  %3440 = vmatpush3.bf16.msra.mxu1 %v3669_v18 }
 0x149   : > { %928 = vmatmul.mubr.bf16.vlgmr.msra.gmra.mrb[0].mxu0 %v3670_v19  ;;  %992 = vmatmul.mubr.bf16.vlgmr.msra.gmra.mrb[0].mxu1 %v3673_v20 }
 0x14a   : > { %935 = vmatprep.mubr.bf16.mxu0 %v3676_v21  ;;  %999 = vmatprep.mubr.bf16.mxu1 %v3678_v22 }
 0x151   : > { %936 = vmatmul.mubr.bf16.gmra.mrb[4].mxu0 %v3680_v23  ;;  %1000 = vmatmul.mubr.bf16.gmra.mrb[4].mxu1 %v3681_v24 }
 0x152   : > { %943 = vmatprep.mubr.bf16.mxu0 %v3682_v25  ;;  %1007 = vmatprep.mubr.bf16.mxu1 %v3684_v26 }
 0x159   : > { %944 = vmatmul.mubr.bf16.gmra.mrb[8].mxu0 %v3686_v27  ;;  %1008 = vmatmul.mubr.bf16.gmra.mrb[8].mxu1 %v3687_v28  ;;  %v547_v27 = vld [vmem:[#allocation2 + $0x20] sm:$0xff] }
 0x15a   : > { %951 = vmatprep.mubr.bf16.mxu0 %v3688_v29  ;;  %1015 = vmatprep.mubr.bf16.mxu1 %v3690_v30  ;;  %v563_v29 = vld [vmem:[#allocation2 + $0xa0] sm:$0xff] }
 0x161   : > { %952 = vmatmul.mubr.bf16.gmra.mrb[12].mxu0 %v3692_v31  ;;  %1016 = vmatmul.mubr.bf16.gmra.mrb[12].mxu1 %v3693_v32 }
 0x162   : > { %959 = vmatprep.mubr.bf16.mxu0 %v3694_v33  ;;  %1023 = vmatprep.mubr.bf16.mxu1 %v3696_v34 }
 0x169   : > { %960 = vmatmul.mubr.bf16.gmra.mrb[16].mxu0 %v3698_v35  ;;  %1024 = vmatmul.mubr.bf16.gmra.mrb[16].mxu1 %v3699_v36  ;;  %v548_v35 = vld [vmem:[#allocation2 + $0x28] sm:$0xff] }
 0x16a   : > { %967 = vmatprep.mubr.bf16.mxu0 %v3700_v37  ;;  %1031 = vmatprep.mubr.bf16.mxu1 %v3702_v38  ;;  %v564_v37 = vld [vmem:[#allocation2 + $0xa8] sm:$0xff] }
 0x171   : > { %968 = vmatmul.mubr.bf16.gmra.mrb[20].mxu0 %v3704_v39  ;;  %1032 = vmatmul.mubr.bf16.gmra.mrb[20].mxu1 %v3705_v40 }
 0x172   : > { %975 = vmatprep.mubr.bf16.mxu0 %v3706_v41  ;;  %1039 = vmatprep.mubr.bf16.mxu1 %v3708_v42 }
 0x179   : > { %976 = vmatmul.mubr.bf16.gmra.mrb[24].mxu0 %v3710_v43  ;;  %1040 = vmatmul.mubr.bf16.gmra.mrb[24].mxu1 %v3711_v44 }
 0x17a   : > { %983 = vmatprep.mubr.bf16.mxu0 %v3712_v45  ;;  %1047 = vmatprep.mubr.bf16.mxu1 %v3714_v46 }
 0x181   : > { %984 = vmatmul.mubr.bf16.gmra.mrb[28].mxu0 %v3716_v47  ;;  %1048 = vmatmul.mubr.bf16.gmra.mrb[28].mxu1 %v3717_v48  ;;  %v549_v47 = vld [vmem:[#allocation2 + $0x30] sm:$0xff] }
 0x21c   : > { %v3185_v49 = vpop.f32.mrb[0].mxu0  ;;  %v3233_v50 = vpop.f32.mrb[0].mxu1 }
 0x21d   : > { %v3186_v52 = vpop.f32.mrb[1].mxu0  ;;  %v3234_v54 = vpop.f32.mrb[1].mxu1 }
 0x21e   : > { %v3187_v55 = vadd.f32 %v3186_v52, %v3185_v49  ;;  %v3235_v56 = vadd.f32 %v3234_v54, %v3233_v50  ;;  %v3188_v57 = vpop.f32.mrb[2].mxu0  ;;  %v3236_v58 = vpop.f32.mrb[2].mxu1  ;;  %v565_v49 = vld [vmem:[#allocation2 + $0xb0] sm:$0xff] }
 0x21f   : > { %v3189_v60 = vpop.f32.mrb[3].mxu0  ;;  %v3237_v62 = vpop.f32.mrb[3].mxu1 }
 0x220   : > { %v1056_v63 = vadd.f32 %v3187_v55, %v543_v51  ;;  %v1072_v0 = vadd.f32 %v3235_v56, %v559_v53  ;;  %v3190_v1 = vadd.f32 %v3189_v60, %v3188_v57  ;;  %v3238_v2 = vadd.f32 %v3237_v62, %v3236_v58  ;;  %v550_v55 = vld [vmem:[#allocation2 + $0x38] sm:$0xff] }
 0x221   : > { %v566_v57 = vld [vmem:[#allocation2 + $0xb8] sm:$0xff] }
 0x222   : > { %1088 = vst [vmem:[#allocation2] sm:$0xff] %v1056_v63  ;;  %1104 = vst [vmem:[#allocation2 + $0x80] sm:$0xff] %v1072_v0  ;;  %v1057_v3 = vadd.f32 %v3190_v1, %v544_v59  ;;  %v1073_v4 = vadd.f32 %v3238_v2, %v560_v61 }
 0x224   : > { %1089 = vst [vmem:[#allocation2 + $0x8] sm:$0xff] %v1057_v3  ;;  %1105 = vst [vmem:[#allocation2 + $0x88] sm:$0xff] %v1073_v4  ;;  %v3191_v5 = vpop.f32.mrb[4].mxu0  ;;  %v3239_v6 = vpop.f32.mrb[4].mxu1  ;;  %v551_v3 = vld [vmem:[#allocation2 + $0x40] sm:$0xff] }
 0x225   : > { %v3192_v8 = vpop.f32.mrb[5].mxu0  ;;  %v3240_v10 = vpop.f32.mrb[5].mxu1 }
 0x226   : > { %v3193_v11 = vadd.f32 %v3192_v8, %v3191_v5  ;;  %v3241_v12 = vadd.f32 %v3240_v10, %v3239_v6  ;;  %v3194_v13 = vpop.f32.mrb[6].mxu0  ;;  %v3242_v14 = vpop.f32.mrb[6].mxu1  ;;  %v567_v5 = vld [vmem:[#allocation2 + $0xc0] sm:$0xff] }
 0x227   : > { %v3195_v16 = vpop.f32.mrb[7].mxu0  ;;  %v3243_v18 = vpop.f32.mrb[7].mxu1 }
 0x228   : > { %v1058_v19 = vadd.f32 %v3193_v11, %v545_v7  ;;  %v1074_v20 = vadd.f32 %v3241_v12, %v561_v9  ;;  %v3196_v21 = vadd.f32 %v3195_v16, %v3194_v13  ;;  %v3244_v22 = vadd.f32 %v3243_v18, %v3242_v14  ;;  %v552_v11 = vld [vmem:[#allocation2 + $0x48] sm:$0xff] }
 0x229   : > { %v568_v13 = vld [vmem:[#allocation2 + $0xc8] sm:$0xff] }
 0x22a   : > { %1090 = vst [vmem:[#allocation2 + $0x10] sm:$0xff] %v1058_v19  ;;  %1106 = vst [vmem:[#allocation2 + $0x90] sm:$0xff] %v1074_v20  ;;  %v1059_v23 = vadd.f32 %v3196_v21, %v546_v15  ;;  %v1075_v24 = vadd.f32 %v3244_v22, %v562_v17 }
 0x22c   : > { %1091 = vst [vmem:[#allocation2 + $0x18] sm:$0xff] %v1059_v23  ;;  %1107 = vst [vmem:[#allocation2 + $0x98] sm:$0xff] %v1075_v24  ;;  %v3197_v25 = vpop.f32.mrb[8].mxu0  ;;  %v3245_v26 = vpop.f32.mrb[8].mxu1  ;;  %v553_v23 = vld [vmem:[#allocation2 + $0x50] sm:$0xff] }
 0x22d   : > { %v3198_v28 = vpop.f32.mrb[9].mxu0  ;;  %v3246_v30 = vpop.f32.mrb[9].mxu1 }
 0x22e   : > { %v3199_v31 = vadd.f32 %v3198_v28, %v3197_v25  ;;  %v3247_v32 = vadd.f32 %v3246_v30, %v3245_v26  ;;  %v3200_v33 = vpop.f32.mrb[10].mxu0  ;;  %v3248_v34 = vpop.f32.mrb[10].mxu1  ;;  %v569_v25 = vld [vmem:[#allocation2 + $0xd0] sm:$0xff] }
 0x22f   : > { %v3201_v36 = vpop.f32.mrb[11].mxu0  ;;  %v3249_v38 = vpop.f32.mrb[11].mxu1 }
 0x230   : > { %v1060_v39 = vadd.f32 %v3199_v31, %v547_v27  ;;  %v1076_v40 = vadd.f32 %v3247_v32, %v563_v29  ;;  %v3202_v41 = vadd.f32 %v3201_v36, %v3200_v33  ;;  %v3250_v42 = vadd.f32 %v3249_v38, %v3248_v34  ;;  %v554_v31 = vld [vmem:[#allocation2 + $0x58] sm:$0xff] }
 0x231   : > { %v570_v33 = vld [vmem:[#allocation2 + $0xd8] sm:$0xff] }
 0x232   : > { %1092 = vst [vmem:[#allocation2 + $0x20] sm:$0xff] %v1060_v39  ;;  %1108 = vst [vmem:[#allocation2 + $0xa0] sm:$0xff] %v1076_v40  ;;  %v1061_v43 = vadd.f32 %v3202_v41, %v548_v35  ;;  %v1077_v44 = vadd.f32 %v3250_v42, %v564_v37 }
 0x234   : > { %1093 = vst [vmem:[#allocation2 + $0x28] sm:$0xff] %v1061_v43  ;;  %1109 = vst [vmem:[#allocation2 + $0xa8] sm:$0xff] %v1077_v44  ;;  %v3203_v45 = vpop.f32.mrb[12].mxu0  ;;  %v3251_v46 = vpop.f32.mrb[12].mxu1  ;;  %v555_v43 = vld [vmem:[#allocation2 + $0x60] sm:$0xff] }
 0x235   : > { %v3204_v48 = vpop.f32.mrb[13].mxu0  ;;  %v3252_v50 = vpop.f32.mrb[13].mxu1 }
 0x236   : > { %v3205_v51 = vadd.f32 %v3204_v48, %v3203_v45  ;;  %v3253_v52 = vadd.f32 %v3252_v50, %v3251_v46  ;;  %v3206_v53 = vpop.f32.mrb[14].mxu0  ;;  %v3254_v54 = vpop.f32.mrb[14].mxu1  ;;  %v571_v45 = vld [vmem:[#allocation2 + $0xe0] sm:$0xff] }
 0x237   : > { %v3207_v56 = vpop.f32.mrb[15].mxu0  ;;  %v3255_v58 = vpop.f32.mrb[15].mxu1 }
 0x238   : > { %v1062_v59 = vadd.f32 %v3205_v51, %v549_v47  ;;  %v1078_v60 = vadd.f32 %v3253_v52, %v565_v49  ;;  %v3208_v61 = vadd.f32 %v3207_v56, %v3206_v53  ;;  %v3256_v62 = vadd.f32 %v3255_v58, %v3254_v54  ;;  %v556_v51 = vld [vmem:[#allocation2 + $0x68] sm:$0xff] }
 0x239   : > { %v572_v53 = vld [vmem:[#allocation2 + $0xe8] sm:$0xff] }
 0x23a   : > { %1094 = vst [vmem:[#allocation2 + $0x30] sm:$0xff] %v1062_v59  ;;  %1110 = vst [vmem:[#allocation2 + $0xb0] sm:$0xff] %v1078_v60  ;;  %v1063_v63 = vadd.f32 %v3208_v61, %v550_v55  ;;  %v1079_v0 = vadd.f32 %v3256_v62, %v566_v57 }
 0x23c   : > { %1095 = vst [vmem:[#allocation2 + $0x38] sm:$0xff] %v1063_v63  ;;  %1111 = vst [vmem:[#allocation2 + $0xb8] sm:$0xff] %v1079_v0  ;;  %v3209_v1 = vpop.f32.mrb[16].mxu0  ;;  %v3257_v2 = vpop.f32.mrb[16].mxu1  ;;  %v557_v63 = vld [vmem:[#allocation2 + $0x70] sm:$0xff] }
 0x23d   : > { %v3210_v4 = vpop.f32.mrb[17].mxu0  ;;  %v3258_v6 = vpop.f32.mrb[17].mxu1 }
 0x23e   : > { %v3211_v7 = vadd.f32 %v3210_v4, %v3209_v1  ;;  %v3259_v8 = vadd.f32 %v3258_v6, %v3257_v2  ;;  %v3212_v9 = vpop.f32.mrb[18].mxu0  ;;  %v3260_v10 = vpop.f32.mrb[18].mxu1  ;;  %v573_v1 = vld [vmem:[#allocation2 + $0xf0] sm:$0xff] }
 0x23f   : > { %v3213_v12 = vpop.f32.mrb[19].mxu0  ;;  %v3261_v14 = vpop.f32.mrb[19].mxu1 }
 0x240   : > { %v1064_v15 = vadd.f32 %v3211_v7, %v551_v3  ;;  %v1080_v16 = vadd.f32 %v3259_v8, %v567_v5  ;;  %v3214_v17 = vadd.f32 %v3213_v12, %v3212_v9  ;;  %v3262_v18 = vadd.f32 %v3261_v14, %v3260_v10  ;;  %v558_v7 = vld [vmem:[#allocation2 + $0x78] sm:$0xff] }
 0x241   : > { %v574_v9 = vld [vmem:[#allocation2 + $0xf8] sm:$0xff] }
 0x242   : > { %1096 = vst [vmem:[#allocation2 + $0x40] sm:$0xff] %v1064_v15  ;;  %1112 = vst [vmem:[#allocation2 + $0xc0] sm:$0xff] %v1080_v16  ;;  %v1065_v19 = vadd.f32 %v3214_v17, %v552_v11  ;;  %v1081_v20 = vadd.f32 %v3262_v18, %v568_v13  ;;  %v3718_v17 = vld [vmem:[#allocation11] sm:$0xff] (!%p2787_p8)   ;;  %v3719_v18 = vld [vmem:[#allocation11 + $0x8] sm:$0xff] (!%p2787_p8)  }
 0x243   : > { %3329 = vmatprep.subr.bf16.mxu0 (!%p2787_p8), %v3718_v17 }
 0x244   : > { %1097 = vst [vmem:[#allocation2 + $0x48] sm:$0xff] %v1065_v19  ;;  %1113 = vst [vmem:[#allocation2 + $0xc8] sm:$0xff] %v1081_v20  ;;  %v3215_v21 = vpop.f32.mrb[20].mxu0  ;;  %v3263_v22 = vpop.f32.mrb[20].mxu1  ;;  %3330 = vmatpush3.bf16.msra.mxu0 (!%p2787_p8), %v3718_v17  ;;  %v3720_v19 = vld [vmem:[#allocation11 + $0x10] sm:$0xff] (!%p2787_p8)   ;;  %v3721_v20 = vld [vmem:[#allocation11 + $0x18] sm:$0xff] (!%p2787_p8)  }
 0x245   : > { %v3216_v24 = vpop.f32.mrb[21].mxu0  ;;  %v3264_v26 = vpop.f32.mrb[21].mxu1  ;;  %3331 = vmatprep.subr.bf16.mxu0 (!%p2787_p8), %v3719_v18 }
 0x246   : > { %v3217_v27 = vadd.f32 %v3216_v24, %v3215_v21  ;;  %v3265_v28 = vadd.f32 %v3264_v26, %v3263_v22  ;;  %v3218_v29 = vpop.f32.mrb[22].mxu0  ;;  %v3266_v30 = vpop.f32.mrb[22].mxu1  ;;  %v3726_v21 = vld [vmem:[%s4632_s18] sm:$0xff] (!%p2787_p8)   ;;  %v3724_v24 = vld [vmem:[#allocation11 + $0x30] sm:$0xff] (!%p2787_p8)  }
 0x247   : > { %v3219_v32 = vpop.f32.mrb[23].mxu0  ;;  %v3267_v34 = vpop.f32.mrb[23].mxu1  ;;  %3345 = vmatprep.mubr.bf16.mxu0 (!%p2787_p8), %v3726_v21  ;;  %v3722_v22 = vld [vmem:[#allocation11 + $0x20] sm:$0xff] (!%p2787_p8)   ;;  %v1141_v21 = vld [vmem:[#allocation2 + $0x88] sm:$0xff] (!%p2787_p8) }
 0x248   : > { %v1066_v35 = vadd.f32 %v3217_v27, %v553_v23  ;;  %v1082_v36 = vadd.f32 %v3265_v28, %v569_v25  ;;  %v3220_v37 = vadd.f32 %v3219_v32, %v3218_v29  ;;  %v3268_v38 = vadd.f32 %v3267_v34, %v3266_v30  ;;  %3332 = vmatpush3.bf16.msra.mxu0 (!%p2787_p8), %v3719_v18  ;;  %v3723_v23 = vld [vmem:[#allocation11 + $0x28] sm:$0xff] (!%p2787_p8)   ;;  %v3725_v25 = vld [vmem:[#allocation11 + $0x38] sm:$0xff] (!%p2787_p8)   ;;  %v3728_v26 = vld [vmem:[#allocation9] sm:$0xff] (!%p2787_p8)  }
 0x249   : > { %3333 = vmatprep.subr.bf16.mxu0 (!%p2787_p8), %v3720_v19  ;;  %v3727_v27 = vld [vmem:[%s4632_s18 + $0x8] sm:$0xff] (!%p2787_p8)   ;;  %v3729_v28 = vld [vmem:[%s4632_s18 + $0x10] sm:$0xff] (!%p2787_p8)   ;;  %v3732_v32 = vld [vmem:[%s4632_s18 + $0x20] sm:$0xff] (!%p2787_p8)  }
 0x24a   : > { %1098 = vst [vmem:[#allocation2 + $0x50] sm:$0xff] %v1066_v35  ;;  %1114 = vst [vmem:[#allocation2 + $0xd0] sm:$0xff] %v1082_v36  ;;  %v1067_v39 = vadd.f32 %v3220_v37, %v554_v31  ;;  %v1083_v40 = vadd.f32 %v3268_v38, %v570_v33  ;;  %v3731_v29 = vld [vmem:[#allocation9 + $0x8] sm:$0xff] (!%p2787_p8)   ;;  %v3734_v30 = vld [vmem:[#allocation9 + $0x10] sm:$0xff] (!%p2787_p8)  }
 0x24b   : > { %v3730_v31 = vld [vmem:[%s4632_s18 + $0x18] sm:$0xff] (!%p2787_p8)   ;;  %v3740_v34 = vld [vmem:[#allocation9 + $0x20] sm:$0xff] (!%p2787_p8)   ;;  %v3733_v38 = vld [vmem:[%s4632_s18 + $0x28] sm:$0xff] (!%p2787_p8)  }
 0x24c   : > { %1099 = vst [vmem:[#allocation2 + $0x58] sm:$0xff] %v1067_v39  ;;  %1115 = vst [vmem:[#allocation2 + $0xd8] sm:$0xff] %v1083_v40  ;;  %v3221_v41 = vpop.f32.mrb[24].mxu0  ;;  %v3269_v42 = vpop.f32.mrb[24].mxu1  ;;  %3334 = vmatpush3.bf16.msra.mxu0 (!%p2787_p8), %v3720_v19  ;;  %v3737_v33 = vld [vmem:[#allocation9 + $0x18] sm:$0xff] (!%p2787_p8)   ;;  %v3735_v40 = vld [vmem:[%s4632_s18 + $0x30] sm:$0xff] (!%p2787_p8)  }
 0x24d   : > { %v3222_v44 = vpop.f32.mrb[25].mxu0  ;;  %v3270_v46 = vpop.f32.mrb[25].mxu1  ;;  %3335 = vmatprep.subr.bf16.mxu0 (!%p2787_p8), %v3721_v20  ;;  %v3750_v35 = vld [vmem:[#allocation12 + $0x4] ss:$8 sps:$4 sm:$0xff] (!%p2787_p8)   ;;  %v3752_v36 = vld [vmem:[#allocation12] ss:$8 sps:$4 sm:$0xff] (!%p2787_p8)  }
 0x24e   : > { %v3223_v47 = vadd.f32 %v3222_v44, %v3221_v41  ;;  %v3271_v48 = vadd.f32 %v3270_v46, %v3269_v42  ;;  %v3224_v49 = vpop.f32.mrb[26].mxu0  ;;  %v3272_v50 = vpop.f32.mrb[26].mxu1  ;;  %v3753_v37 = vld [vmem:[#allocation12 + $0x14] ss:$8 sps:$4 sm:$0xff] (!%p2787_p8)   ;;  %1933 = vmatprep.subr.bf16.mxu1 (!%p2787_p8), %v3750_v35  ;;  %v3755_v39 = vld [vmem:[#allocation12 + $0x10] ss:$8 sps:$4 sm:$0xff] (!%p2787_p8)  }
 0x24f   : > { %v3225_v52 = vpop.f32.mrb[27].mxu0  ;;  %v3273_v54 = vpop.f32.mrb[27].mxu1  ;;  %1934 = vmatpush1.bf16.msra.mxu1 (!%p2787_p8), %v3752_v36  ;;  %v3743_v41 = vld [vmem:[#allocation9 + $0x28] sm:$0xff] (!%p2787_p8)   ;;  %v3759_v44 = vld [vmem:[#allocation12 + $0x34] ss:$8 sps:$4 sm:$0xff] (!%p2787_p8)  }
 0x250   : > { %v1068_v55 = vadd.f32 %v3223_v47, %v555_v43  ;;  %v1084_v56 = vadd.f32 %v3271_v48, %v571_v45  ;;  %v3226_v57 = vadd.f32 %v3225_v52, %v3224_v49  ;;  %v3274_v58 = vadd.f32 %v3273_v54, %v3272_v50  ;;  %3336 = vmatpush3.bf16.msra.mxu0 (!%p2787_p8), %v3721_v20  ;;  %v3756_v42 = vld [vmem:[#allocation12 + $0x24] ss:$8 sps:$4 sm:$0xff] (!%p2787_p8)   ;;  %v3758_v43 = vld [vmem:[#allocation12 + $0x20] ss:$8 sps:$4 sm:$0xff] (!%p2787_p8)   ;;  %v3746_v45 = vld [vmem:[#allocation9 + $0x30] sm:$0xff] (!%p2787_p8)  }
 0x251   : > { %3337 = vmatprep.subr.bf16.mxu0 (!%p2787_p8), %v3722_v22  ;;  %1935 = vmatprep.subr.bf16.mxu1 (!%p2787_p8), %v3753_v37  ;;  %v3736_v46 = vld [vmem:[%s4632_s18 + $0x38] sm:$0xff] (!%p2787_p8)   ;;  %v3738_v48 = vld [vmem:[%s4632_s18 + $0x40] sm:$0xff] (!%p2787_p8)   ;;  %v1150_v36 = vld [vmem:[#allocation2 + $0xd0] sm:$0xff] (!%p2787_p8) }
 0x252   : > { %1100 = vst [vmem:[#allocation2 + $0x60] sm:$0xff] %v1068_v55  ;;  %1116 = vst [vmem:[#allocation2 + $0xe0] sm:$0xff] %v1084_v56  ;;  %v1069_v59 = vadd.f32 %v3226_v57, %v556_v51  ;;  %v1085_v60 = vadd.f32 %v3274_v58, %v572_v53  ;;  %v3761_v47 = vld [vmem:[#allocation12 + $0x30] ss:$8 sps:$4 sm:$0xff] (!%p2787_p8)   ;;  %v3762_v50 = vld [vmem:[#allocation12 + $0x44] ss:$8 sps:$4 sm:$0xff] (!%p2787_p8)  }
 0x253   : > { %1936 = vmatpush1.bf16.msra.mxu1 (!%p2787_p8), %v3755_v39  ;;  %v3749_v49 = vld [vmem:[#allocation9 + $0x38] sm:$0xff] (!%p2787_p8)   ;;  %v3764_v51 = vld [vmem:[#allocation12 + $0x40] ss:$8 sps:$4 sm:$0xff] (!%p2787_p8)   ;;  %v3741_v55 = vld [vmem:[%s4632_s18 + $0x50] sm:$0xff] (!%p2787_p8)  }
 0x254   : > { %1101 = vst [vmem:[#allocation2 + $0x68] sm:$0xff] %v1069_v59  ;;  %1117 = vst [vmem:[#allocation2 + $0xe8] sm:$0xff] %v1085_v60  ;;  %v3227_v61 = vpop.f32.mrb[28].mxu0  ;;  %v3275_v62 = vpop.f32.mrb[28].mxu1  ;;  %3338 = vmatpush3.bf16.msra.mxu0 (!%p2787_p8), %v3722_v22  ;;  %1937 = vmatprep.subr.bf16.mxu1 (!%p2787_p8), %v3756_v42  ;;  %v3765_v52 = vld [vmem:[#allocation12 + $0x54] ss:$8 sps:$4 sm:$0xff] (!%p2787_p8)  }
 0x255   : > { %v3228_v0 = vpop.f32.mrb[29].mxu0  ;;  %v3276_v2 = vpop.f32.mrb[29].mxu1  ;;  %3339 = vmatprep.subr.bf16.mxu0 (!%p2787_p8), %v3723_v23  ;;  %v3739_v53 = vld [vmem:[%s4632_s18 + $0x48] sm:$0xff] (!%p2787_p8)   ;;  %v3767_v54 = vld [vmem:[#allocation12 + $0x50] ss:$8 sps:$4 sm:$0xff] (!%p2787_p8)   ;;  %v3744_v57 = vld [vmem:[%s4632_s18 + $0x60] sm:$0xff] (!%p2787_p8)  }
 0x256   : > { %v3229_v3 = vadd.f32 %v3228_v0, %v3227_v61  ;;  %v3277_v4 = vadd.f32 %v3276_v2, %v3275_v62  ;;  %v3230_v5 = vpop.f32.mrb[30].mxu0  ;;  %v3278_v6 = vpop.f32.mrb[30].mxu1  ;;  %1123 = sbr.rel (%p2787_p8) target bundleno = 1236 (0x4d4), region = 84  ;;  %v3742_v56 = vld [vmem:[%s4632_s18 + $0x58] sm:$0xff] (!%p2787_p8)   ;;  %v3745_v58 = vld [vmem:[%s4632_s18 + $0x68] sm:$0xff] (!%p2787_p8)   ;;  %v3747_v59 = vld [vmem:[%s4632_s18 + $0x70] sm:$0xff] (!%p2787_p8)  }
 0x257   : > { %v3231_v8 = vpop.f32.mrb[31].mxu0  ;;  %v3279_v10 = vpop.f32.mrb[31].mxu1  ;;  %1938 = vmatpush1.bf16.msra.mxu1 (!%p2787_p8), %v3758_v43  ;;  %v1124_v60 = vld [vmem:[#allocation2] sm:$0xff] (!%p2787_p8)  ;;  %v1125_v61 = vld [vmem:[#allocation2 + $0x8] sm:$0xff] (!%p2787_p8)  ;;  %v3748_v62 = vld [vmem:[%s4632_s18 + $0x78] sm:$0xff] (!%p2787_p8)  }
 0x258   : > { %v1070_v11 = vadd.f32 %v3229_v3, %v557_v63  ;;  %v1086_v12 = vadd.f32 %v3277_v4, %v573_v1  ;;  %v3232_v13 = vadd.f32 %v3231_v8, %v3230_v5  ;;  %v3280_v14 = vadd.f32 %v3279_v10, %v3278_v6  ;;  %3340 = vmatpush3.bf16.msra.mxu0 (!%p2787_p8), %v3723_v23  ;;  %v1126_v0 = vld [vmem:[#allocation2 + $0x10] sm:$0xff] (!%p2787_p8)  ;;  %v1127_v1 = vld [vmem:[#allocation2 + $0x18] sm:$0xff] (!%p2787_p8)  ;;  %v1128_v2 = vld [vmem:[#allocation2 + $0x20] sm:$0xff] (!%p2787_p8) }
 0x259   : > { %3341 = vmatprep.subr.bf16.mxu0 (!%p2787_p8), %v3724_v24  ;;  %1939 = vmatprep.subr.bf16.mxu1 (!%p2787_p8), %v3759_v44  ;;  %v1156_v63 = vpack.c.bf16 (!%p2787_p8), %v1125_v61, %v1124_v60  ;;  %v1129_v3 = vld [vmem:[#allocation2 + $0x28] sm:$0xff] (!%p2787_p8)  ;;  %v1157_v4 = vpack.c.bf16 (!%p2787_p8), %v1127_v1, %v1126_v0  ;;  %v1130_v6 = vld [vmem:[#allocation2 + $0x30] sm:$0xff] (!%p2787_p8)  ;;  %v1132_v8 = vld [vmem:[#allocation2 + $0x40] sm:$0xff] (!%p2787_p8) }
 0x25a   : > { %1102 = vst [vmem:[#allocation2 + $0x70] sm:$0xff] %v1070_v11  ;;  %1118 = vst [vmem:[#allocation2 + $0xf0] sm:$0xff] %v1086_v12  ;;  %v1071_v15 = vadd.f32 %v3232_v13, %v558_v7  ;;  %v1087_v16 = vadd.f32 %v3280_v14, %v574_v9  ;;  %v1158_v5 = vpack.c.bf16 (!%p2787_p8), %v1129_v3, %v1128_v2  ;;  %v1131_v7 = vld [vmem:[#allocation2 + $0x38] sm:$0xff] (!%p2787_p8)  ;;  %v1133_v9 = vld [vmem:[#allocation2 + $0x48] sm:$0xff] (!%p2787_p8) }
 0x25b   : > { %1940 = vmatpush1.bf16.msra.mxu1 (!%p2787_p8), %v3761_v47  ;;  %v1159_v10 = vpack.c.bf16 (!%p2787_p8), %v1131_v7, %v1130_v6  ;;  %v1160_v11 = vpack.c.bf16 (!%p2787_p8), %v1133_v9, %v1132_v8  ;;  %v1134_v12 = vld [vmem:[#allocation2 + $0x50] sm:$0xff] (!%p2787_p8)  ;;  %v1135_v13 = vld [vmem:[#allocation2 + $0x58] sm:$0xff] (!%p2787_p8)  ;;  %v1136_v14 = vld [vmem:[#allocation2 + $0x60] sm:$0xff] (!%p2787_p8) }
 0x25c   : > { %1103 = vst [vmem:[#allocation2 + $0x78] sm:$0xff] %v1071_v15  ;;  %1119 = vst [vmem:[#allocation2 + $0xf8] sm:$0xff] %v1087_v16  ;;  %3342 = vmatpush3.bf16.msra.mxu0 (!%p2787_p8), %v3724_v24  ;;  %1941 = vmatprep.subr.bf16.mxu1 (!%p2787_p8), %v3762_v50  ;;  %v1137_v15 = vld [vmem:[#allocation2 + $0x68] sm:$0xff] (!%p2787_p8)  ;;  %v1161_v16 = vpack.c.bf16 (!%p2787_p8), %v1135_v13, %v1134_v12  ;;  %v1140_v20 = vld [vmem:[#allocation2 + $0x80] sm:$0xff] (!%p2787_p8) }
 0x25d   : > { %3343 = vmatprep.subr.bf16.mxu0 %v3725_v25  ;;  %v1162_v17 = vpack.c.bf16 %v1137_v15, %v1136_v14  ;;  %v1164_v23 = vpack.c.bf16 %v1141_v21, %v1140_v20  ;;  %v1142_v24 = vld [vmem:[#allocation2 + $0x90] sm:$0xff]  ;;  %v1151_v37 = vld [vmem:[#allocation2 + $0xd8] sm:$0xff]  ;;  %v1153_v39 = vld [vmem:[#allocation2 + $0xe8] sm:$0xff] }
 0x25e   : > { %v3771_v47 = vld [vmem:[#allocation12 + $0x74] ss:$8 sps:$4 sm:$0xff]   ;;  %v4720_v50 = vld [vmem:[%s5071_s1] ss:$0 sm:$0xff] }
 0x25f   : > { %1942 = vmatpush1.bf16.msra.mxu1 %v3764_v51 }
 0x260   : > { %3344 = vmatpush3.bf16.msra.mxu0 %v3725_v25  ;;  %1943 = vmatprep.subr.bf16.mxu1 %v3765_v52  ;;  %v1143_v25 = vld [vmem:[#allocation2 + $0x98] sm:$0xff] }
 0x261   : > { %3377 = vmatprep.subr.bf16.mxu0 %v3728_v26  ;;  %v1138_v18 = vld [vmem:[#allocation2 + $0x70] sm:$0xff] }
 0x262   : > { %v1154_v42 = vld [vmem:[#allocation2 + $0xf0] sm:$0xff] }
 0x263   : > { %3346 = vmatmul.mubr.bf16.vlgmr.msra.gmra.mrb[0].mxu0 %v3727_v27  ;;  %1944 = vmatpush1.bf16.msra.mxu1 %v3767_v54  ;;  %v1139_v19 = vld [vmem:[#allocation2 + $0x78] sm:$0xff]  ;;  %v1145_v27 = vld [vmem:[#allocation2 + $0xa8] sm:$0xff] }
 0x264   : > { %3378 = vmatpush3.bf16.msra.mxu0 %v3728_v26  ;;  %3349 = vmatprep.mubr.bf16.mxu0 %v3729_v28  ;;  %v1163_v22 = vpack.c.bf16 %v1139_v19, %v1138_v18  ;;  %v1144_v26 = vld [vmem:[#allocation2 + $0xa0] sm:$0xff]  ;;  %v1165_v28 = vpack.c.bf16 %v1143_v25, %v1142_v24  ;;  %v1155_v43 = vld [vmem:[#allocation2 + $0xf8] sm:$0xff] }
 0x265   : > { %3379 = vmatprep.subr.bf16.mxu0 %v3731_v29  ;;  %v1171_v44 = vpack.c.bf16 %v1155_v43, %v1154_v42 }
 0x268   : > { %3380 = vmatpush3.bf16.msra.mxu0 %v3731_v29  ;;  %v1166_v29 = vpack.c.bf16 %v1145_v27, %v1144_v26 }
 0x269   : > { %3381 = vmatprep.subr.bf16.mxu0 %v3734_v30 }
 0x26b   : > { %3350 = vmatmul.mubr.bf16.gmra.mrb[4].mxu0 %v3730_v31  ;;  %v1147_v31 = vld [vmem:[#allocation2 + $0xb8] sm:$0xff] }
 0x26c   : > { %3353 = vmatprep.mubr.bf16.mxu0 %v3732_v32  ;;  %3382 = vmatpush3.bf16.msra.mxu0 %v3734_v30  ;;  %v1146_v30 = vld [vmem:[#allocation2 + $0xb0] sm:$0xff]  ;;  %v1148_v32 = vld [vmem:[#allocation2 + $0xc0] sm:$0xff] }
 0x26d   : > { %3383 = vmatprep.subr.bf16.mxu0 %v3737_v33 }
 0x270   : > { %3384 = vmatpush3.bf16.msra.mxu0 %v3737_v33  ;;  %v1149_v33 = vld [vmem:[#allocation2 + $0xc8] sm:$0xff] }
 0x271   : > { %3385 = vmatprep.subr.bf16.mxu0 %v3740_v34  ;;  %v1168_v35 = vpack.c.bf16 %v1149_v33, %v1148_v32 }
 0x273   : > { %3354 = vmatmul.mubr.bf16.gmra.mrb[8].mxu0 %v3733_v38  ;;  %v1152_v38 = vld [vmem:[#allocation2 + $0xe0] sm:$0xff] }
 0x274   : > { %3357 = vmatprep.mubr.bf16.mxu0 %v3735_v40  ;;  %3386 = vmatpush3.bf16.msra.mxu0 %v3740_v34  ;;  %v1167_v34 = vpack.c.bf16 %v1147_v31, %v1146_v30  ;;  %v1169_v40 = vpack.c.bf16 %v1151_v37, %v1150_v36 }
 0x275   : > { %3387 = vmatprep.subr.bf16.mxu0 %v3743_v41 }
 0x278   : > { %3388 = vmatpush3.bf16.msra.mxu0 %v3743_v41  ;;  %v1170_v41 = vpack.c.bf16 %v1153_v39, %v1152_v38 }
 0x279   : > { %3389 = vmatprep.subr.bf16.mxu0 %v3746_v45 }
 0x27b   : > { %3358 = vmatmul.mubr.bf16.gmra.mrb[12].mxu0 %v3736_v46  ;;  %v3770_v46 = vld [vmem:[#allocation12 + $0x60] ss:$8 sps:$4 sm:$0xff]  }
 0x27c   : > { %3361 = vmatprep.mubr.bf16.mxu0 %v3738_v48  ;;  %3390 = vmatpush3.bf16.msra.mxu0 %v3746_v45  ;;  %v3768_v45 = vld [vmem:[#allocation12 + $0x64] ss:$8 sps:$4 sm:$0xff]   ;;  %v3773_v48 = vld [vmem:[#allocation12 + $0x70] ss:$8 sps:$4 sm:$0xff]  }
 0x27d   : > { %3391 = vmatprep.subr.bf16.mxu0 %v3749_v49  ;;  %1945 = vmatprep.subr.bf16.mxu1 %v3768_v45 }
 0x27e   : > { %1946 = vmatpush1.bf16.msra.mxu1 %v3770_v46 }
 0x27f   : > { %1947 = vmatprep.subr.bf16.mxu1 %v3771_v47 }
 0x280   : > { %3392 = vmatpush3.bf16.msra.mxu0 %v3749_v49  ;;  %v4156_v49 = vmov 0  }
 0x281   : > { %1965 = vmatprep.mubr.bf16.mxu1 %v4156_v49 }
 0x282   : > { %1948 = vmatpush1.bf16.msra.mxu1 %v3773_v48 }
 0x283   : > { %3362 = vmatmul.mubr.bf16.gmra.mrb[16].mxu0 %v3739_v53 }
 0x284   : > { %3365 = vmatprep.mubr.bf16.mxu0 %v3741_v55 }
 0x28b   : > { %3366 = vmatmul.mubr.bf16.gmra.mrb[20].mxu0 %v3742_v56 }
 0x28c   : > { %3369 = vmatprep.mubr.bf16.mxu0 %v3744_v57 }
 0x293   : > { %3370 = vmatmul.mubr.bf16.gmra.mrb[24].mxu0 %v3745_v58 }
 0x294   : > { %3373 = vmatprep.mubr.bf16.mxu0 %v3747_v59 }
 0x29b   : > { %3374 = vmatmul.mubr.bf16.gmra.mrb[28].mxu0 %v3748_v62 }
 0x29c   : > { %3393 = vmatprep.mubr.bf16.mxu0 %v1156_v63 }
 0x2a3   : > { %3394 = vmatmul.mubr.bf16.vlgmr.msra.gmra.mrb[0].mxu0 %v1157_v4 }
 0x2a4   : > { %3397 = vmatprep.mubr.bf16.mxu0 %v1158_v5 }
 0x2ab   : > { %3398 = vmatmul.mubr.bf16.gmra.mrb[4].mxu0 %v1159_v10 }
 0x2ac   : > { %3401 = vmatprep.mubr.bf16.mxu0 %v1160_v11 }
 0x2b3   : > { %3402 = vmatmul.mubr.bf16.gmra.mrb[8].mxu0 %v1161_v16 }
 0x2b4   : > { %3405 = vmatprep.mubr.bf16.mxu0 %v1162_v17 }
 0x2bb   : > { %3406 = vmatmul.mubr.bf16.gmra.mrb[12].mxu0 %v1163_v22 }
 0x2bc   : > { %3409 = vmatprep.mubr.bf16.mxu0 %v1164_v23 }
 0x2c3   : > { %3410 = vmatmul.mubr.bf16.gmra.mrb[16].mxu0 %v1165_v28 }
 0x2c4   : > { %3413 = vmatprep.mubr.bf16.mxu0 %v1166_v29 }
 0x2cb   : > { %3414 = vmatmul.mubr.bf16.gmra.mrb[20].mxu0 %v1167_v34 }
 0x2cc   : > { %3417 = vmatprep.mubr.bf16.mxu0 %v1168_v35 }
 0x2d3   : > { %3418 = vmatmul.mubr.bf16.gmra.mrb[24].mxu0 %v1169_v40 }
 0x2d4   : > { %3421 = vmatprep.mubr.bf16.mxu0 %v1170_v41 }
 0x2db   : > { %3422 = vmatmul.mubr.bf16.gmra.mrb[28].mxu0 %v1171_v44 }
 0x376   : > { %v3395_v51 = vpop.f32.mrb[0].mxu0 }
 0x377   : > { %v1759_v52 = vadd.f32 %v3395_v51, %v4720_v50  ;;  %v1623_v53 = vpop.f32.mrb[1].mxu0 }
 0x378   : > { %v1757_v54 = vadd.f32 %v4720_v50, %v1623_v53  ;;  %v3396_v55 = vpop.f32.mrb[2].mxu0 }
 0x379   : > { %v1760_v56 = vadd.f32 %v3396_v55, %v4720_v50  ;;  %v1626_v57 = vpop.f32.mrb[3].mxu0  ;;  %v1791_v59 = vmax.f32 %v1759_v52, 0.0 }
 0x37a   : > { %v1758_v58 = vadd.f32 %v4720_v50, %v1626_v57  ;;  %v1789_v61 = vmax.f32 %v1757_v54, 0.0 }
 0x37b   : > { %v1792_v60 = vmax.f32 %v1760_v56, 0.0 }
 0x37c   : > { %v1790_v62 = vmax.f32 %v1758_v58, 0.0 }
 0x37d   : > { %v1822_v63 = vpack.c.bf16 %v1792_v60, %v1791_v59 }
 0x37e   : > { %v1821_v0 = vpack.c.bf16 %v1790_v62, %v1789_v61  ;;  %v3399_v1 = vpop.f32.mrb[4].mxu0 }
 0x37f   : > { %v1763_v2 = vadd.f32 %v3399_v1, %v4720_v50  ;;  %v1639_v3 = vpop.f32.mrb[5].mxu0 }
 0x380   : > { %v1761_v4 = vadd.f32 %v4720_v50, %v1639_v3  ;;  %v3400_v5 = vpop.f32.mrb[6].mxu0  ;;  %1966 = vmatmul.mubr.bf16.vlgmr.msra.gmra.mrb[0].mxu1 %v1821_v0 }
 0x381   : > { %v1764_v6 = vadd.f32 %v3400_v5, %v4720_v50  ;;  %v1642_v7 = vpop.f32.mrb[7].mxu0  ;;  %1975 = vmatprep.mubr.bf16.mxu1 %v4156_v49  ;;  %v1795_v9 = vmax.f32 %v1763_v2, 0.0 }
 0x382   : > { %v1762_v8 = vadd.f32 %v4720_v50, %v1642_v7  ;;  %v1793_v11 = vmax.f32 %v1761_v4, 0.0 }
 0x383   : > { %v1796_v10 = vmax.f32 %v1764_v6, 0.0 }
 0x384   : > { %v1794_v12 = vmax.f32 %v1762_v8, 0.0 }
 0x385   : > { %v1824_v13 = vpack.c.bf16 %v1796_v10, %v1795_v9 }
 0x386   : > { %v1823_v14 = vpack.c.bf16 %v1794_v12, %v1793_v11  ;;  %v3403_v15 = vpop.f32.mrb[8].mxu0 }
 0x387   : > { %v1767_v16 = vadd.f32 %v3403_v15, %v4720_v50  ;;  %v1655_v17 = vpop.f32.mrb[9].mxu0 }
 0x388   : > { %v1765_v18 = vadd.f32 %v4720_v50, %v1655_v17  ;;  %v3404_v19 = vpop.f32.mrb[10].mxu0  ;;  %1976 = vmatmul.mubr.bf16.gmra.mrb[4].mxu1 %v1822_v63 }
 0x389   : > { %v1768_v20 = vadd.f32 %v3404_v19, %v4720_v50  ;;  %v1658_v21 = vpop.f32.mrb[11].mxu0  ;;  %1985 = vmatprep.mubr.bf16.mxu1 %v4156_v49  ;;  %v1799_v23 = vmax.f32 %v1767_v16, 0.0 }
 0x38a   : > { %v1766_v22 = vadd.f32 %v4720_v50, %v1658_v21  ;;  %v1797_v25 = vmax.f32 %v1765_v18, 0.0 }
 0x38b   : > { %v1800_v24 = vmax.f32 %v1768_v20, 0.0 }
 0x38c   : > { %v1798_v26 = vmax.f32 %v1766_v22, 0.0 }
 0x38d   : > { %v1826_v27 = vpack.c.bf16 %v1800_v24, %v1799_v23 }
 0x38e   : > { %v1825_v28 = vpack.c.bf16 %v1798_v26, %v1797_v25  ;;  %v3407_v29 = vpop.f32.mrb[12].mxu0 }
 0x38f   : > { %v1771_v30 = vadd.f32 %v3407_v29, %v4720_v50  ;;  %v1671_v31 = vpop.f32.mrb[13].mxu0 }
 0x390   : > { %v1769_v32 = vadd.f32 %v4720_v50, %v1671_v31  ;;  %v3408_v33 = vpop.f32.mrb[14].mxu0  ;;  %1986 = vmatmul.mubr.bf16.gmra.mrb[8].mxu1 %v1823_v14 }
 0x391   : > { %v1772_v34 = vadd.f32 %v3408_v33, %v4720_v50  ;;  %v1674_v35 = vpop.f32.mrb[15].mxu0  ;;  %1995 = vmatprep.mubr.bf16.mxu1 %v4156_v49  ;;  %v1803_v37 = vmax.f32 %v1771_v30, 0.0 }
 0x392   : > { %v1770_v36 = vadd.f32 %v4720_v50, %v1674_v35  ;;  %v1801_v39 = vmax.f32 %v1769_v32, 0.0 }
 0x393   : > { %v1804_v38 = vmax.f32 %v1772_v34, 0.0 }
 0x394   : > { %v1802_v40 = vmax.f32 %v1770_v36, 0.0 }
 0x395   : > { %v4741_v41 = vpack.c.bf16 %v1804_v38, %v1803_v37  ;;  %v4775_v38 = vld [vmem:[%s5072_s8] ss:$0 sm:$0xff] }
 0x396   : > { %v1827_v42 = vpack.c.bf16 %v1802_v40, %v1801_v39  ;;  %v3411_v43 = vpop.f32.mrb[16].mxu0 }
 0x397   : > { %v1775_v44 = vadd.f32 %v3411_v43, %v4720_v50  ;;  %v1687_v45 = vpop.f32.mrb[17].mxu0 }
 0x398   : > { %v1773_v46 = vadd.f32 %v4720_v50, %v1687_v45  ;;  %v3412_v47 = vpop.f32.mrb[18].mxu0  ;;  %1996 = vmatmul.mubr.bf16.gmra.mrb[12].mxu1 %v1824_v13 }
 0x399   : > { %v1776_v48 = vadd.f32 %v3412_v47, %v4720_v50  ;;  %v1690_v51 = vpop.f32.mrb[19].mxu0  ;;  %2005 = vmatprep.mubr.bf16.mxu1 %v4156_v49  ;;  %v1807_v53 = vmax.f32 %v1775_v44, 0.0 }
 0x39a   : > { %v1774_v52 = vadd.f32 %v4720_v50, %v1690_v51  ;;  %v1805_v55 = vmax.f32 %v1773_v46, 0.0 }
 0x39b   : > { %v1808_v54 = vmax.f32 %v1776_v48, 0.0 }
 0x39c   : > { %v1806_v56 = vmax.f32 %v1774_v52, 0.0 }
 0x39d   : > { %v1830_v57 = vpack.c.bf16 %v1808_v54, %v1807_v53 }
 0x39e   : > { %v1829_v58 = vpack.c.bf16 %v1806_v56, %v1805_v55  ;;  %v3415_v59 = vpop.f32.mrb[20].mxu0 }
 0x39f   : > { %v1779_v60 = vadd.f32 %v3415_v59, %v4720_v50  ;;  %v1703_v61 = vpop.f32.mrb[21].mxu0 }
 0x3a0   : > { %v1777_v62 = vadd.f32 %v4720_v50, %v1703_v61  ;;  %v3416_v63 = vpop.f32.mrb[22].mxu0  ;;  %2006 = vmatmul.mubr.bf16.gmra.mrb[16].mxu1 %v1825_v28 }
 0x3a1   : > { %v1780_v0 = vadd.f32 %v3416_v63, %v4720_v50  ;;  %v1706_v1 = vpop.f32.mrb[23].mxu0  ;;  %2015 = vmatprep.mubr.bf16.mxu1 %v4156_v49  ;;  %v1811_v3 = vmax.f32 %v1779_v60, 0.0 }
 0x3a2   : > { %v1778_v2 = vadd.f32 %v4720_v50, %v1706_v1  ;;  %v1809_v5 = vmax.f32 %v1777_v62, 0.0 }
 0x3a3   : > { %v1812_v4 = vmax.f32 %v1780_v0, 0.0 }
 0x3a4   : > { %v1810_v6 = vmax.f32 %v1778_v2, 0.0 }
 0x3a5   : > { %v1832_v7 = vpack.c.bf16 %v1812_v4, %v1811_v3 }
 0x3a6   : > { %v1831_v8 = vpack.c.bf16 %v1810_v6, %v1809_v5  ;;  %v3419_v9 = vpop.f32.mrb[24].mxu0 }
 0x3a7   : > { %v1783_v10 = vadd.f32 %v3419_v9, %v4720_v50  ;;  %v1719_v11 = vpop.f32.mrb[25].mxu0 }
 0x3a8   : > { %v1781_v12 = vadd.f32 %v4720_v50, %v1719_v11  ;;  %v3420_v13 = vpop.f32.mrb[26].mxu0  ;;  %2016 = vmatmul.mubr.bf16.gmra.mrb[20].mxu1 %v1826_v27 }
 0x3a9   : > { %v1784_v14 = vadd.f32 %v3420_v13, %v4720_v50  ;;  %v1722_v15 = vpop.f32.mrb[27].mxu0  ;;  %2025 = vmatprep.mubr.bf16.mxu1 %v4156_v49  ;;  %v1815_v17 = vmax.f32 %v1783_v10, 0.0 }
 0x3aa   : > { %v1782_v16 = vadd.f32 %v4720_v50, %v1722_v15  ;;  %v1813_v19 = vmax.f32 %v1781_v12, 0.0 }
 0x3ab   : > { %v1816_v18 = vmax.f32 %v1784_v14, 0.0 }
 0x3ac   : > { %v1814_v20 = vmax.f32 %v1782_v16, 0.0 }
 0x3ad   : > { %v1834_v21 = vpack.c.bf16 %v1816_v18, %v1815_v17 }
 0x3ae   : > { %v1833_v22 = vpack.c.bf16 %v1814_v20, %v1813_v19  ;;  %v3423_v23 = vpop.f32.mrb[28].mxu0 }
 0x3af   : > { %v1787_v24 = vadd.f32 %v3423_v23, %v4720_v50  ;;  %v1735_v25 = vpop.f32.mrb[29].mxu0 }
 0x3b0   : > { %v1785_v26 = vadd.f32 %v4720_v50, %v1735_v25  ;;  %v3424_v27 = vpop.f32.mrb[30].mxu0  ;;  %2026 = vmatmul.mubr.bf16.gmra.mrb[24].mxu1 %v1827_v42 }
 0x3b1   : > { %v1788_v28 = vadd.f32 %v3424_v27, %v4720_v50  ;;  %v1738_v29 = vpop.f32.mrb[31].mxu0  ;;  %2035 = vmatprep.mubr.bf16.mxu1 %v4156_v49  ;;  %v1819_v31 = vmax.f32 %v1787_v24, 0.0 }
 0x3b2   : > { %v1786_v30 = vadd.f32 %v4720_v50, %v1738_v29  ;;  %v1817_v33 = vmax.f32 %v1785_v26, 0.0 }
 0x3b3   : > { %v1820_v32 = vmax.f32 %v1788_v28, 0.0 }
 0x3b4   : > { %v1818_v34 = vmax.f32 %v1786_v30, 0.0 }
 0x3b5   : > { %v1836_v35 = vpack.c.bf16 %v1820_v32, %v1819_v31 }
 0x3b6   : > { %v1835_v36 = vpack.c.bf16 %v1818_v34, %v1817_v33 }
 0x3b8   : > { %2036 = vmatmul.mubr.bf16.gmra.mrb[28].mxu1 %v4741_v41 }
 0x3b9   : > { %2045 = vmatprep.mubr.bf16.mxu1 %v4156_v49 }
 0x3c0   : > { %2046 = vmatmul.mubr.bf16.gmra.mrb[32].mxu1 %v1829_v58 }
 0x3c1   : > { %2055 = vmatprep.mubr.bf16.mxu1 %v4156_v49 }
 0x3c8   : > { %2056 = vmatmul.mubr.bf16.gmra.mrb[36].mxu1 %v1830_v57 }
 0x3c9   : > { %2065 = vmatprep.mubr.bf16.mxu1 %v4156_v49 }
 0x3d0   : > { %2066 = vmatmul.mubr.bf16.gmra.mrb[40].mxu1 %v1831_v8 }
 0x3d1   : > { %2075 = vmatprep.mubr.bf16.mxu1 %v4156_v49 }
 0x3d8   : > { %2076 = vmatmul.mubr.bf16.gmra.mrb[44].mxu1 %v1832_v7 }
 0x3d9   : > { %2085 = vmatprep.mubr.bf16.mxu1 %v4156_v49 }
 0x3e0   : > { %2086 = vmatmul.mubr.bf16.gmra.mrb[48].mxu1 %v1833_v22 }
 0x3e1   : > { %2095 = vmatprep.mubr.bf16.mxu1 %v4156_v49 }
 0x3e8   : > { %2096 = vmatmul.mubr.bf16.gmra.mrb[52].mxu1 %v1834_v21 }
 0x3e9   : > { %2105 = vmatprep.mubr.bf16.mxu1 %v4156_v49 }
 0x3f0   : > { %2106 = vmatmul.mubr.bf16.gmra.mrb[56].mxu1 %v1835_v36 }
 0x3f1   : > { %2115 = vmatprep.mubr.bf16.mxu1 %v4156_v49 }
 0x3f8   : > { %2116 = vmatmul.mubr.bf16.gmra.mrb[60].mxu1 %v1836_v35 }
 0x453   : > { %v1967_v50 = vpop.f32.mrb[0].mxu1 }
 0x454   : > { %v1969_v37 = vpop.f32.mrb[1].mxu1 }
 0x455   : > { %v1971_v39 = vpop.f32.mrb[2].mxu1  ;;  %v2293_v42 = vadd.f32 %v4775_v38, %v1969_v37 }
 0x456   : > { %v2982_v40 = vpack.c.bf16 %v1971_v39, %v1967_v50  ;;  %v1973_v41 = vpop.f32.mrb[3].mxu1 }
 0x457   : > { %v2294_v43 = vadd.f32 %v4775_v38, %v1973_v41 }
 0x458   : > { %2983 = vst [vmem:[%s4646_s0] sm:$0xff] %v2982_v40  }
 0x459   : > { %v3062_v44 = vpack.c.bf16 %v2294_v43, %v2293_v42 }
 0x45b   : > { %3063 = vst [vmem:[%s4648_s13] sm:$0xff] %v3062_v44   ;;  %v1977_v49 = vpop.f32.mrb[4].mxu1 }
 0x45c   : > { %v1979_v45 = vpop.f32.mrb[5].mxu1 }
 0x45d   : > { %v1981_v46 = vpop.f32.mrb[6].mxu1  ;;  %v2295_v51 = vadd.f32 %v4775_v38, %v1979_v45 }
 0x45e   : > { %v2987_v47 = vpack.c.bf16 %v1981_v46, %v1977_v49  ;;  %v1983_v48 = vpop.f32.mrb[7].mxu1 }
 0x45f   : > { %v2296_v52 = vadd.f32 %v4775_v38, %v1983_v48 }
 0x460   : > { %3139 = vst [vmem:[%s4646_s0 + $0x8] sm:$0xff] %v2987_v47  }
 0x461   : > { %v3067_v53 = vpack.c.bf16 %v2296_v52, %v2295_v51 }
 0x463   : > { %3154 = vst [vmem:[%s4648_s13 + $0x8] sm:$0xff] %v3067_v53   ;;  %v1987_v54 = vpop.f32.mrb[8].mxu1 }
 0x464   : > { %v1989_v55 = vpop.f32.mrb[9].mxu1 }
 0x465   : > { %v1991_v56 = vpop.f32.mrb[10].mxu1  ;;  %v2297_v59 = vadd.f32 %v4775_v38, %v1989_v55 }
 0x466   : > { %v2992_v57 = vpack.c.bf16 %v1991_v56, %v1987_v54  ;;  %v1993_v58 = vpop.f32.mrb[11].mxu1 }
 0x467   : > { %v2298_v60 = vadd.f32 %v4775_v38, %v1993_v58 }
 0x468   : > { %3140 = vst [vmem:[%s4646_s0 + $0x10] sm:$0xff] %v2992_v57  }
 0x469   : > { %v3072_v61 = vpack.c.bf16 %v2298_v60, %v2297_v59 }
 0x46b   : > { %3155 = vst [vmem:[%s4648_s13 + $0x10] sm:$0xff] %v3072_v61   ;;  %v1997_v62 = vpop.f32.mrb[12].mxu1 }
 0x46c   : > { %v1999_v63 = vpop.f32.mrb[13].mxu1 }
 0x46d   : > { %v2001_v0 = vpop.f32.mrb[14].mxu1  ;;  %v2299_v3 = vadd.f32 %v4775_v38, %v1999_v63 }
 0x46e   : > { %v2997_v1 = vpack.c.bf16 %v2001_v0, %v1997_v62  ;;  %v2003_v2 = vpop.f32.mrb[15].mxu1 }
 0x46f   : > { %v2300_v4 = vadd.f32 %v4775_v38, %v2003_v2 }
 0x470   : > { %3141 = vst [vmem:[%s4646_s0 + $0x18] sm:$0xff] %v2997_v1  }
 0x471   : > { %v3077_v5 = vpack.c.bf16 %v2300_v4, %v2299_v3 }
 0x473   : > { %3156 = vst [vmem:[%s4648_s13 + $0x18] sm:$0xff] %v3077_v5   ;;  %v2007_v6 = vpop.f32.mrb[16].mxu1 }
 0x474   : > { %v2009_v7 = vpop.f32.mrb[17].mxu1 }
 0x475   : > { %v2011_v8 = vpop.f32.mrb[18].mxu1  ;;  %v2301_v11 = vadd.f32 %v4775_v38, %v2009_v7 }
 0x476   : > { %v3002_v9 = vpack.c.bf16 %v2011_v8, %v2007_v6  ;;  %v2013_v10 = vpop.f32.mrb[19].mxu1 }
 0x477   : > { %v2302_v12 = vadd.f32 %v4775_v38, %v2013_v10 }
 0x478   : > { %3142 = vst [vmem:[%s4646_s0 + $0x20] sm:$0xff] %v3002_v9  }
 0x479   : > { %v3082_v13 = vpack.c.bf16 %v2302_v12, %v2301_v11 }
 0x47b   : > { %3157 = vst [vmem:[%s4648_s13 + $0x20] sm:$0xff] %v3082_v13   ;;  %v2017_v14 = vpop.f32.mrb[20].mxu1 }
 0x47c   : > { %v2019_v15 = vpop.f32.mrb[21].mxu1 }
 0x47d   : > { %v2021_v16 = vpop.f32.mrb[22].mxu1  ;;  %v2303_v19 = vadd.f32 %v4775_v38, %v2019_v15 }
 0x47e   : > { %v3007_v17 = vpack.c.bf16 %v2021_v16, %v2017_v14  ;;  %v2023_v18 = vpop.f32.mrb[23].mxu1 }
 0x47f   : > { %v2304_v20 = vadd.f32 %v4775_v38, %v2023_v18 }
 0x480   : > { %3143 = vst [vmem:[%s4646_s0 + $0x28] sm:$0xff] %v3007_v17  }
 0x481   : > { %v3087_v21 = vpack.c.bf16 %v2304_v20, %v2303_v19 }
 0x483   : > { %3158 = vst [vmem:[%s4648_s13 + $0x28] sm:$0xff] %v3087_v21   ;;  %v2027_v22 = vpop.f32.mrb[24].mxu1 }
 0x484   : > { %v2029_v23 = vpop.f32.mrb[25].mxu1 }
 0x485   : > { %v2031_v24 = vpop.f32.mrb[26].mxu1  ;;  %v2305_v27 = vadd.f32 %v4775_v38, %v2029_v23 }
 0x486   : > { %v3012_v25 = vpack.c.bf16 %v2031_v24, %v2027_v22  ;;  %v2033_v26 = vpop.f32.mrb[27].mxu1 }
 0x487   : > { %v2306_v28 = vadd.f32 %v4775_v38, %v2033_v26 }
 0x488   : > { %3144 = vst [vmem:[%s4646_s0 + $0x30] sm:$0xff] %v3012_v25  }
 0x489   : > { %v3092_v29 = vpack.c.bf16 %v2306_v28, %v2305_v27 }
 0x48b   : > { %3159 = vst [vmem:[%s4648_s13 + $0x30] sm:$0xff] %v3092_v29   ;;  %v2037_v30 = vpop.f32.mrb[28].mxu1 }
 0x48c   : > { %v2039_v31 = vpop.f32.mrb[29].mxu1 }
 0x48d   : > { %v2041_v32 = vpop.f32.mrb[30].mxu1  ;;  %v2307_v35 = vadd.f32 %v4775_v38, %v2039_v31 }
 0x48e   : > { %v3017_v33 = vpack.c.bf16 %v2041_v32, %v2037_v30  ;;  %v2043_v34 = vpop.f32.mrb[31].mxu1 }
 0x48f   : > { %v2308_v36 = vadd.f32 %v4775_v38, %v2043_v34 }
 0x490   : > { %3145 = vst [vmem:[%s4646_s0 + $0x38] sm:$0xff] %v3017_v33  }
 0x491   : > { %v3097_v50 = vpack.c.bf16 %v2308_v36, %v2307_v35 }
 0x493   : > { %3160 = vst [vmem:[%s4648_s13 + $0x38] sm:$0xff] %v3097_v50   ;;  %v2047_v37 = vpop.f32.mrb[32].mxu1 }
 0x494   : > { %v2049_v39 = vpop.f32.mrb[33].mxu1 }
 0x495   : > { %v2051_v40 = vpop.f32.mrb[34].mxu1  ;;  %v2309_v43 = vadd.f32 %v4775_v38, %v2049_v39 }
 0x496   : > { %v3022_v41 = vpack.c.bf16 %v2051_v40, %v2047_v37  ;;  %v2053_v42 = vpop.f32.mrb[35].mxu1 }
 0x497   : > { %v2310_v44 = vadd.f32 %v4775_v38, %v2053_v42 }
 0x498   : > { %3146 = vst [vmem:[%s4646_s0 + $0x40] sm:$0xff] %v3022_v41  }
 0x499   : > { %v3102_v49 = vpack.c.bf16 %v2310_v44, %v2309_v43 }
 0x49b   : > { %3161 = vst [vmem:[%s4648_s13 + $0x40] sm:$0xff] %v3102_v49   ;;  %v2057_v45 = vpop.f32.mrb[36].mxu1 }
 0x49c   : > { %v2059_v46 = vpop.f32.mrb[37].mxu1 }
 0x49d   : > { %v2061_v47 = vpop.f32.mrb[38].mxu1  ;;  %v2311_v52 = vadd.f32 %v4775_v38, %v2059_v46 }
 0x49e   : > { %v3027_v48 = vpack.c.bf16 %v2061_v47, %v2057_v45  ;;  %v2063_v51 = vpop.f32.mrb[39].mxu1 }
 0x49f   : > { %v2312_v53 = vadd.f32 %v4775_v38, %v2063_v51 }
 0x4a0   : > { %3147 = vst [vmem:[%s4646_s0 + $0x48] sm:$0xff] %v3027_v48  }
 0x4a1   : > { %v3107_v54 = vpack.c.bf16 %v2312_v53, %v2311_v52 }
 0x4a3   : > { %3162 = vst [vmem:[%s4648_s13 + $0x48] sm:$0xff] %v3107_v54   ;;  %v2067_v55 = vpop.f32.mrb[40].mxu1 }
 0x4a4   : > { %v2069_v56 = vpop.f32.mrb[41].mxu1 }
 0x4a5   : > { %v2071_v57 = vpop.f32.mrb[42].mxu1  ;;  %v2313_v60 = vadd.f32 %v4775_v38, %v2069_v56 }
 0x4a6   : > { %v3032_v58 = vpack.c.bf16 %v2071_v57, %v2067_v55  ;;  %v2073_v59 = vpop.f32.mrb[43].mxu1 }
 0x4a7   : > { %v2314_v61 = vadd.f32 %v4775_v38, %v2073_v59 }
 0x4a8   : > { %3148 = vst [vmem:[%s4646_s0 + $0x50] sm:$0xff] %v3032_v58  }
 0x4a9   : > { %v3112_v62 = vpack.c.bf16 %v2314_v61, %v2313_v60 }
 0x4ab   : > { %3163 = vst [vmem:[%s4648_s13 + $0x50] sm:$0xff] %v3112_v62   ;;  %v2077_v63 = vpop.f32.mrb[44].mxu1 }
 0x4ac   : > { %v2079_v0 = vpop.f32.mrb[45].mxu1 }
 0x4ad   : > { %v2081_v1 = vpop.f32.mrb[46].mxu1  ;;  %v2315_v4 = vadd.f32 %v4775_v38, %v2079_v0 }
 0x4ae   : > { %v3037_v2 = vpack.c.bf16 %v2081_v1, %v2077_v63  ;;  %v2083_v3 = vpop.f32.mrb[47].mxu1 }
 0x4af   : > { %v2316_v5 = vadd.f32 %v4775_v38, %v2083_v3 }
 0x4b0   : > { %3149 = vst [vmem:[%s4646_s0 + $0x58] sm:$0xff] %v3037_v2  }
 0x4b1   : > { %v3117_v6 = vpack.c.bf16 %v2316_v5, %v2315_v4 }
 0x4b3   : > { %3164 = vst [vmem:[%s4648_s13 + $0x58] sm:$0xff] %v3117_v6   ;;  %v2087_v7 = vpop.f32.mrb[48].mxu1 }
 0x4b4   : > { %v2089_v8 = vpop.f32.mrb[49].mxu1 }
 0x4b5   : > { %v2091_v9 = vpop.f32.mrb[50].mxu1  ;;  %v2317_v12 = vadd.f32 %v4775_v38, %v2089_v8 }
 0x4b6   : > { %v3042_v10 = vpack.c.bf16 %v2091_v9, %v2087_v7  ;;  %v2093_v11 = vpop.f32.mrb[51].mxu1 }
 0x4b7   : > { %v2318_v13 = vadd.f32 %v4775_v38, %v2093_v11 }
 0x4b8   : > { %3150 = vst [vmem:[%s4646_s0 + $0x60] sm:$0xff] %v3042_v10  }
 0x4b9   : > { %v3122_v14 = vpack.c.bf16 %v2318_v13, %v2317_v12 }
 0x4bb   : > { %3165 = vst [vmem:[%s4648_s13 + $0x60] sm:$0xff] %v3122_v14   ;;  %v2097_v15 = vpop.f32.mrb[52].mxu1 }
 0x4bc   : > { %v2099_v16 = vpop.f32.mrb[53].mxu1 }
 0x4bd   : > { %v2101_v17 = vpop.f32.mrb[54].mxu1  ;;  %v2319_v20 = vadd.f32 %v4775_v38, %v2099_v16 }
 0x4be   : > { %v3047_v18 = vpack.c.bf16 %v2101_v17, %v2097_v15  ;;  %v2103_v19 = vpop.f32.mrb[55].mxu1 }
 0x4bf   : > { %v2320_v21 = vadd.f32 %v4775_v38, %v2103_v19 }
 0x4c0   : > { %3151 = vst [vmem:[%s4646_s0 + $0x68] sm:$0xff] %v3047_v18  }
 0x4c1   : > { %v3127_v22 = vpack.c.bf16 %v2320_v21, %v2319_v20 }
 0x4c3   : > { %3166 = vst [vmem:[%s4648_s13 + $0x68] sm:$0xff] %v3127_v22   ;;  %v2107_v23 = vpop.f32.mrb[56].mxu1 }
 0x4c4   : > { %v2109_v24 = vpop.f32.mrb[57].mxu1 }
 0x4c5   : > { %v2111_v25 = vpop.f32.mrb[58].mxu1  ;;  %v2321_v28 = vadd.f32 %v4775_v38, %v2109_v24 }
 0x4c6   : > { %v3052_v26 = vpack.c.bf16 %v2111_v25, %v2107_v23  ;;  %v2113_v27 = vpop.f32.mrb[59].mxu1 }
 0x4c7   : > { %v2322_v29 = vadd.f32 %v4775_v38, %v2113_v27 }
 0x4c8   : > { %3152 = vst [vmem:[%s4646_s0 + $0x70] sm:$0xff] %v3052_v26  }
 0x4c9   : > { %v3132_v30 = vpack.c.bf16 %v2322_v29, %v2321_v28 }
 0x4cb   : > { %3167 = vst [vmem:[%s4648_s13 + $0x70] sm:$0xff] %v3132_v30   ;;  %v2117_v31 = vpop.f32.mrb[60].mxu1 }
 0x4cc   : > { %v2119_v32 = vpop.f32.mrb[61].mxu1 }
 0x4cd   : > { %v2121_v33 = vpop.f32.mrb[62].mxu1  ;;  %v2323_v36 = vadd.f32 %v4775_v38, %v2119_v32 }
 0x4ce   : > { %v3057_v34 = vpack.c.bf16 %v2121_v33, %v2117_v31  ;;  %v2123_v35 = vpop.f32.mrb[63].mxu1 }
 0x4cf   : > { %v2324_v50 = vadd.f32 %v4775_v38, %v2123_v35 }
 0x4d0   : > { %3153 = vst [vmem:[%s4646_s0 + $0x78] sm:$0xff] %v3057_v34  }
 0x4d1   : > { %v3137_v37 = vpack.c.bf16 %v2324_v50, %v2323_v36 }
 0x4d3   : > { %3168 = vst [vmem:[%s4648_s13 + $0x78] sm:$0xff] %v3137_v37  }
 0x4d4 PF: > { %s5073_s28 = sld [smem:[#allocation27_spill]]  ;;  %s2504_s24 = sshll.u32 %s4646_s0, 4  ;;  %s4850_s24 = int_to_ptr.vmem [resolvable:$true] %s2504_s24 }
 0x4d5   : > { %s5074_s18 = sld [smem:[#allocation41_spill]]  ;;  %s2486_s14 = scalar_lea.sflag [#allocation5], %s4629_s9 }
 0x4d6   : > { %s3948_s1 = scalar_lea.vmem %s4850_s24, 2048  ;;  %p5076_p2 = scmp.ne.s32.totalorder %s5051_s27, 0 }
 0x4d7   : > { %p3949_p4 = scmp.ne.s32.totalorder %s4850_s24, %s3948_s1  ;;  %s4157_s3 = smov [#allocation14]  }
 0x4d8   : > { %s3952_s29 = sshll.u32 %s4157_s3, 4  ;;  %s3953_s29 = int_to_ptr.vmem [resolvable:$false] %s3952_s29 }
 0x4d9   : > { %p3950_p0 = pnand %p3949_p4, %p5076_p2  ;;  %s3954_s8 = scalar_lea.vmem %s3953_s29, 4096 }
 0x4da   : > { %s2977_s26 = sshll.u32 %s5073_s28, 11  ;;  %p3955_p9 = scmp.lt.s32.totalorder %s4850_s24, %s3953_s29 }
 0x4db   : > { %s5075_s7 = smov %s5074_s18  ;;  %s4847_s23 = scalar_lea.hbm %s5074_s18, %s2977_s26 }
 0x4dc   : > { %p3951_p5 = pneg %p3950_p0  ;;  %p3956_p13 = scmp.lt.s32.totalorder %s3954_s8, %s3948_s1 }
 0x4de   : > { %p3957_p12 = por %p3956_p13, %p3955_p9 }
 0x4e0   : > { %p3958_p1 = pnand %p3957_p12, %p3951_p5 }
 0x4e2   : > { %3961 = shalt.err (!%p3958_p1)
}
 0x4e3   : > { %s3962_s0 = scalar_lea.hbm %s4847_s23, 2048  ;;  %s3966_s18 = scalar_lea.hbm %s5075_s7, 4096 }
 0x4e4   : > { %p3963_p10 = scmp.ne.s32.totalorder %s4847_s23, %s3962_s0  ;;  %p3967_p3 = scmp.lt.u32.totalorder %s4847_s23, %s5075_s7 }
 0x4e5   : > { %p3968_p7 = scmp.lt.u32.totalorder %s3966_s18, %s3962_s0  ;;  %p3970_p4 = scmp.lt.u32.totalorder %s3962_s0, %s4847_s23 }
 0x4e6   : > { %p3964_p6 = pnand %p3963_p10, %p5076_p2 }
 0x4e7   : > { %p3969_p8 = por %p3968_p7, %p3967_p3 }
 0x4e8   : > { %p3965_p11 = pneg %p3964_p6 }
 0x4e9   : > { %p3971_p0 = por %p3970_p4, %p3969_p8 }
 0x4eb   : > { %p3972_p5 = pnand %p3971_p0, %p3965_p11 }
 0x4ed   : > { %3975 = shalt.err (!%p3972_p5)
}
 0x4ee   : > { %s4158_s1 = smov 64   ;;  %s4159_s8 = smov 4  }
 0x4ef   : > { %3491 = dma.vmem_to_hbm [thread:$0]  (%p5076_p2), %s4850_s24, 2048, %s4847_s23, %s2486_s14, %s4158_s1, %s4158_s1, %s4159_s8  }
 0x4f0   : > { %s5077_s2 = sld [smem:[#allocation42_spill]]  ;;  %s2520_s3 = sshll.u32 %s4648_s13, 4  ;;  %s4887_s3 = int_to_ptr.vmem [resolvable:$true] %s2520_s3 }
 0x4f1   : > { %s2491_s29 = scalar_lea.sflag [#allocation16], %s4629_s9  ;;  %s3976_s4 = scalar_lea.vmem %s4887_s3, 2048 }
 0x4f2   : > { %p3977_p9 = scmp.ne.s32.totalorder %s4887_s3, %s3976_s4  ;;  %s4160_s5 = smov [#allocation15]  }
 0x4f3   : > { %s3980_s23 = sshll.u32 %s4160_s5, 4  ;;  %s3981_s23 = int_to_ptr.vmem [resolvable:$false] %s3980_s23 }
 0x4f4   : > { %p3978_p13 = pnand %p3977_p9, %p5076_p2  ;;  %s3982_s28 = scalar_lea.vmem %s3981_s23, 4096 }
 0x4f5   : > { %p3983_p1 = scmp.lt.s32.totalorder %s4887_s3, %s3981_s23  ;;  %p3984_p10 = scmp.lt.s32.totalorder %s3982_s28, %s3976_s4 }
 0x4f6   : > { %s4884_s18 = scalar_lea.hbm %s5077_s2, %s2977_s26  ;;  %p3979_p12 = pneg %p3978_p13 }
 0x4f7   : > { %p3985_p6 = por %p3984_p10, %p3983_p1 }
 0x4f9   : > { %p3986_p11 = pnand %p3985_p6, %p3979_p12 }
 0x4fb   : > { %3989 = shalt.err (!%p3986_p11)
}
 0x4fc   : > { %s3990_s13 = scalar_lea.hbm %s4884_s18, 2048  ;;  %s3994_s5 = scalar_lea.hbm %s5077_s2, 4096 }
 0x4fd   : > { %p3991_p3 = scmp.ne.s32.totalorder %s4884_s18, %s3990_s13  ;;  %p3995_p4 = scmp.lt.u32.totalorder %s4884_s18, %s5077_s2 }
 0x4fe   : > { %p3996_p0 = scmp.lt.u32.totalorder %s3994_s5, %s3990_s13  ;;  %p3998_p9 = scmp.lt.u32.totalorder %s3990_s13, %s4884_s18 }
 0x4ff   : > { %p3992_p7 = pnand %p3991_p3, %p5076_p2 }
 0x500   : > { %p3997_p5 = por %p3996_p0, %p3995_p4 }
 0x501   : > { %p3993_p8 = pneg %p3992_p7 }
 0x502   : > { %p3999_p13 = por %p3998_p9, %p3997_p5 }
 0x504   : > { %p4000_p12 = pnand %p3999_p13, %p3993_p8 }
 0x506   : > { %4003 = shalt.err (!%p4000_p12)
}
 0x507   : > { %3492 = dma.vmem_to_hbm [thread:$0]  (%p5076_p2), %s4887_s3, 2048, %s4884_s18, %s2491_s29, %s4158_s1, %s4158_s1, %s4159_s8  }
 0x508 PF: > { %p3529_p1 = scmp.ge.s32.totalorder %s4142_s22, 2  ;;  %s2535_s4 = sand.u32 1, %s4090_s30  }
 0x509   : > { %p5078_p10 = scmp.ne.s32.totalorder %s5054_s25, 0  ;;  %s2536_s15 = scalar_lea.sflag [#allocation5], %s2535_s4 }
 0x50b   : > { %p3516_p6 = pnand %p3529_p1, %p5078_p10 }
 0x50d   : > { %4081 = dma.done.wait (!%p3516_p6), %s2536_s15, 2048  }
 0x50e   : > { %4083 = vsyncadd (!%p3516_p6), %s2536_s15, 4294965248  ;;  %s2545_s27 = scalar_lea.sflag [#allocation16], %s2535_s4 }
 0x50f   : > { %4085 = dma.done.wait (!%p3516_p6), %s2545_s27, 2048  }
 0x510   : > { %4087 = vsyncadd (!%p3516_p6), %s2545_s27, 4294965248  ;;  %s34_s22 = sadd.s32 1, %s4142_s22   ;;  %s5080_s1 = sld [smem:[#allocation24_spill]] }
 0x511   : > { %p4921_p11 = scmp.ge.s32.totalorder %s34_s22, 6   ;;  %s5081_s13 = sld [smem:[#allocation25_spill]] }
 0x512   : > { %s5082_s14 = sld [smem:[#allocation31_spill]]  ;;  %s5083_s25 = sld [smem:[#allocation29_spill]] }
 0x513   : > { %s5084_s8 = sld [smem:[#allocation30_spill]]  ;;  %s5085_s30 = smov %s4094_s10 }
 0x514   : > { %s5086_s10 = smov %s4098_s11  ;;  %s5087_s11 = smov %s4539_s12 }
 0x515   : > { %s5089_s15 = smov %s4118_s16  ;;  %s5090_s16 = smov %s4122_s17 }
 0x516   : > { %s5088_s12 = smov %s5080_s1  ;;  %s5091_s17 = smov %s4468_s19 }
 0x517   : > { %s5092_s18 = smov %s4134_s20  ;;  %s5093_s19 = smov %s4138_s21 }
 0x518   : > { %s5094_s20 = smov %s5083_s25  ;;  %33 = sbr.rel (!%p4921_p11) target bundleno = 26 (0x1a), region = 158 }
 0x519   : > { %s5095_s21 = smov %s5084_s8 }
 0x51f   :  { %2550 = vsyncpa [#allocation4], 1 }
 0x520   :  { %2552 = vsyncpa [#allocation4 + $0x1], 1 }
 0x521   :  { %2553 = vsyncpa [#allocation7], 1 }
 0x522   :  { %2555 = vsyncpa [#allocation7 + $0x1], 1 }
 0x523   :  { %2556 = vsyncpa [#allocation10], 1 }
 0x524   :  { %2557 = vsyncpa [#allocation13], 1 }
 0x525   :  { %2558 = vsyncpa [#allocation5], 1 }
 0x526   :  { %2560 = vsyncpa [#allocation5 + $0x1], 1 }
 0x527   :  { %2561 = vsyncpa [#allocation16], 1 }
 0x528   :  { %2563 = vsyncpa [#allocation16 + $0x1], 1 }

</bundles_post_ra>
